<compile_context>
chip_gen: v6e
topology: v6e:2x2x1
jax: 0.10.0
libtpu: 0.0.40
codegen_flags: <defaults>
</compile_context>

<pallas_src>
import math
import functools

import jax
import jax.numpy as jnp
from jax.experimental import pallas as pl
from jax.experimental.pallas import tpu as pltpu


_INV_SQRT2 = 1.0 / math.sqrt(2.0)


# ---------------------------------------------------------------------------
# helpers traced into the kernel body
# ---------------------------------------------------------------------------
def _layer_norm(v, gamma, beta, eps=1e-6):
    # torch: sigma = std(unbiased).clamp(min=eps); out = (v - mu)/sigma * g + b
    n = v.shape[-1]
    mu = jnp.mean(v, axis=-1, keepdims=True)
    c = v - mu
    var = jnp.sum(c * c, axis=-1, keepdims=True) * (1.0 / (n - 1))
    sigma = jnp.maximum(jnp.sqrt(var), eps)
    inv_sigma = 1.0 / sigma                      # one divide per row, then bcast mul
    return (c * inv_sigma) * gamma + beta


def _gelu_exact(x):
    # x * 0.5 * (1 + erf(x / sqrt(2)))  -- exact erf GELU, as in the module
    return x * 0.5 * (1.0 + jax.lax.erf(x * _INV_SQRT2))


# ---------------------------------------------------------------------------
# Pallas kernel: one batch element per grid step (grid axis marked "parallel")
# ---------------------------------------------------------------------------
def encoder_layer_kernel(n_head,
                         x_ref, mask_ref,
                         wq_ref, wk_ref, wv_ref, wo_ref,
                         g1_ref, b1_ref,
                         w1_ref, c1b_ref, w2_ref, c2b_ref,
                         g2_ref, b2_ref,
                         out_ref):
    x = x_ref[0]                                   # [L, D] float32 (residual path)
    L, D = x.shape
    d_k = D // n_head
    dt = wq_ref.dtype                              # matmul compute dtype (f32 / bf16)
    inv_temper = 1.0 / (d_k ** 0.5)                # static scalar -> multiply, no divide

    masked = mask_ref[0] != 0                      # [L, L] bool, shared across heads

    # --- fused full-width Q/K/V projections (one [L,D]x[D,D] matmul each) ----
    xc = x.astype(dt)
    q = jnp.dot(xc, wq_ref[...], preferred_element_type=jnp.float32)   # [L, D]
    k = jnp.dot(xc, wk_ref[...], preferred_element_type=jnp.float32)
    v = jnp.dot(xc, wv_ref[...], preferred_element_type=jnp.float32)

    # --- per-head attention core; W_o folded into a per-head accumulation ----
    # (heads are contiguous lane slices -> no concatenate / relayout)
    proj = jnp.zeros((L, D), jnp.float32)
    for h in range(n_head):                        # n_head is static
        lo = h * d_k
        q_h = q[:, lo:lo + d_k]                    # [L, d_k]
        k_h = k[:, lo:lo + d_k]
        v_h = v[:, lo:lo + d_k]

        s = jnp.einsum('qd,kd->qk', q_h, k_h,
                       preferred_element_type=jnp.float32) * inv_temper
        s = jnp.where(masked, -1e30, s)            # finite mask: no inf/NaN risk
        m = jnp.max(s, axis=-1, keepdims=True)
        e = jnp.exp(s - m)
        denom = jnp.sum(e, axis=-1, keepdims=True)
        p = e * pl.reciprocal(denom, approx=True)  # EUP reciprocal (free slot)

        ctx = jnp.dot(p, v_h, preferred_element_type=jnp.float32)      # [L, d_k]
        # proj += ctx_h @ Wo[:, lo:lo+d_k].T   (wo_ref holds Wo^T = [in, out])
        proj = proj + jnp.dot(ctx.astype(dt), wo_ref[lo:lo + d_k, :],
                              preferred_element_type=jnp.float32)
    # TODO(synk): attention / projection / FFN dropout omitted (eval-mode forward).

    attn_out = _layer_norm(proj + x, g1_ref[...], b1_ref[...])         # [L, D]

    # --- position-wise FFN (Conv1d k=1 == per-token Linear) ------------------
    h1 = jnp.dot(attn_out.astype(dt), w1_ref[...],
                 preferred_element_type=jnp.float32) + c1b_ref[...]
    h1 = _gelu_exact(h1)
    h2 = jnp.dot(h1.astype(dt), w2_ref[...],
                 preferred_element_type=jnp.float32) + c2b_ref[...]

    out_ref[0] = _layer_norm(attn_out + h2,
                             g2_ref[...], b2_ref[...]).astype(out_ref.dtype)


# ---------------------------------------------------------------------------
# wrapper: parameter layout prep (once, outside the kernel) + pallas_call
# ---------------------------------------------------------------------------
def encoder_layer(x, mask, params, n_head, *, matmul_dtype=jnp.float32):
    B, L, D = x.shape
    d_ff = params['conv1_w'].shape[0]
    f32 = jnp.float32

    # Stack per-head projection weights on the output axis: [H, D, d_k] -> [D, D]
    wq = jnp.transpose(params['w_qs'], (1, 0, 2)).reshape(D, D).astype(matmul_dtype)
    wk = jnp.transpose(params['w_ks'], (1, 0, 2)).reshape(D, D).astype(matmul_dtype)
    wv = jnp.transpose(params['w_vs'], (1, 0, 2)).reshape(D, D).astype(matmul_dtype)
    wo = params['w_o'].T.astype(matmul_dtype)          # nn.Linear [out,in] -> [in,out]
    w1 = params['conv1_w'].T.astype(matmul_dtype)      # Conv1d k=1: [out,in] -> [in,out]
    w2 = params['conv2_w'].T.astype(matmul_dtype)
    c1b = params['conv1_b'].reshape(1, d_ff).astype(f32)
    c2b = params['conv2_b'].reshape(1, D).astype(f32)
    g1 = params['ln1_gamma'].reshape(1, D).astype(f32)
    bt1 = params['ln1_beta'].reshape(1, D).astype(f32)
    g2 = params['ln2_gamma'].reshape(1, D).astype(f32)
    bt2 = params['ln2_beta'].reshape(1, D).astype(f32)

    x_f32 = x.astype(f32)
    mask_i8 = mask.astype(jnp.int8)                    # 4x fewer DMA bytes than int32

    kernel = functools.partial(encoder_layer_kernel, n_head)

    batched = lambda b: (b, 0, 0)                      # per-batch blocks
    fixed = lambda b: (0, 0)                           # weights: same block every step

    in_specs = [
        pl.BlockSpec((1, L, D), batched),              # x
        pl.BlockSpec((1, L, L), batched),              # attention mask (int8)
        pl.BlockSpec((D, D), fixed),                   # Wq (fused heads)
        pl.BlockSpec((D, D), fixed),                   # Wk
        pl.BlockSpec((D, D), fixed),                   # Wv
        pl.BlockSpec((D, D), fixed),                   # Wo^T
        pl.BlockSpec((1, D), fixed),                   # LN1 gamma
        pl.BlockSpec((1, D), fixed),                   # LN1 beta
        pl.BlockSpec((D, d_ff), fixed),                # conv1 weight^T
        pl.BlockSpec((1, d_ff), fixed),                # conv1 bias
        pl.BlockSpec((d_ff, D), fixed),                # conv2 weight^T
        pl.BlockSpec((1, D), fixed),                   # conv2 bias
        pl.BlockSpec((1, D), fixed),                   # LN2 gamma
        pl.BlockSpec((1, D), fixed),                   # LN2 beta
    ]

    return pl.pallas_call(
        kernel,
        out_shape=jax.ShapeDtypeStruct((B, L, D), f32),
        grid=(B,),
        in_specs=in_specs,
        out_specs=pl.BlockSpec((1, L, D), batched),
        compiler_params=pltpu.CompilerParams(
            dimension_semantics=("parallel",),         # shards across TCs on v7x
            vmem_limit_bytes=32 * 1024 * 1024),
    )(x_f32, mask_i8, wq, wk, wv, wo, g1, bt1, w1, c1b, w2, c2b, g2, bt2)


# ---------------------------------------------------------------------------
# pure-JAX reference (mirrors the PyTorch module math) for correctness check
# ---------------------------------------------------------------------------
def encoder_layer_ref(x, mask, params, n_head):
    x = x.astype(jnp.float32)
    B, L, D = x.shape
    d_k = D // n_head
    temper = d_k ** 0.5

    def ln(v, g, b, eps=1e-6):
        mu = jnp.mean(v, axis=-1, keepdims=True)
        c = v - mu
        var = jnp.sum(c * c, axis=-1, keepdims=True) / (v.shape[-1] - 1)
        sigma = jnp.maximum(jnp.sqrt(var), eps)
        return (c / sigma) * g.reshape(1, 1, -1) + b.reshape(1, 1, -1)

    q_s = jnp.einsum('bld,hdk->hblk', x, params['w_qs'])
    k_s = jnp.einsum('bld,hdk->hblk', x, params['w_ks'])
    v_s = jnp.einsum('bld,hdk->hblk', x, params['w_vs'])
    s = jnp.einsum('hbqd,hbkd->hbqk', q_s, k_s) / temper
    s = jnp.where(mask[None], -jnp.inf, s)               # torch masked_fill_(-inf)
    p = jax.nn.softmax(s, axis=-1)
    ctx = jnp.einsum('hbqk,hbkd->hbqd', p, v_s)          # [H, B, L, d_k]
    ctx = jnp.transpose(ctx, (1, 2, 0, 3)).reshape(B, L, D)
    proj = ctx @ params['w_o'].T
    attn_out = ln(proj + x, params['ln1_gamma'], params['ln1_beta'])

    h1 = attn_out @ params['conv1_w'].T + params['conv1_b'].reshape(1, 1, -1)
    h1 = h1 * 0.5 * (1.0 + jax.lax.erf(h1 / math.sqrt(2.0)))
    h2 = h1 @ params['conv2_w'].T + params['conv2_b'].reshape(1, 1, -1)
    return ln(attn_out + h2, params['ln2_gamma'], params['ln2_beta'])


# ---------------------------------------------------------------------------
if __name__ == "__main__":
    B, L, D, H, FF = 2, 8, 32, 4, 64
    d_k = D // H
    INIT_RANGE = 0.02

    key = jax.random.PRNGKey(0)
    ks = jax.random.split(key, 14)

    params = {
        'w_qs': INIT_RANGE * jax.random.normal(ks[0], (H, D, d_k), jnp.float32),
        'w_ks': INIT_RANGE * jax.random.normal(ks[1], (H, D, d_k), jnp.float32),
        'w_vs': INIT_RANGE * jax.random.normal(ks[2], (H, D, d_k), jnp.float32),
        'w_o':  INIT_RANGE * jax.random.normal(ks[3], (D, D), jnp.float32),
        # Non-trivial LN affine params to exercise the gamma/beta path.
        'ln1_gamma': 1.0 + 0.1 * jax.random.normal(ks[4], (D,), jnp.float32),
        'ln1_beta':  0.1 * jax.random.normal(ks[5], (D,), jnp.float32),
        # Conv1d(d_model, d_ff, 1): weight [d_ff, d_model, 1] -> squeezed
        'conv1_w': INIT_RANGE * jax.random.normal(ks[6], (FF, D), jnp.float32),
        'conv1_b': 0.01 * jax.random.normal(ks[7], (FF,), jnp.float32),
        'conv2_w': INIT_RANGE * jax.random.normal(ks[8], (D, FF), jnp.float32),
        'conv2_b': 0.01 * jax.random.normal(ks[9], (D,), jnp.float32),
        'ln2_gamma': 1.0 + 0.1 * jax.random.normal(ks[10], (D,), jnp.float32),
        'ln2_beta':  0.1 * jax.random.normal(ks[11], (D,), jnp.float32),
    }

    x = jax.random.normal(ks[12], (B, L, D), jnp.float32)

    # boolean self-attention mask [B, L, L]; True = position masked out.
    # (batch 1 has its last two key positions padded; no fully-masked rows)
    mask = jnp.zeros((B, L, L), dtype=bool)
    mask = mask.at[1, :, L - 2:].set(True)

    ref = encoder_layer_ref(x, mask, params, H)

    # f32 MXU path (portable; v5e-friendly elementwise f32 throughout).
    out = jax.block_until_ready(encoder_layer(x, mask, params, H))
    assert out.shape == (B, L, D)
    # Tolerance accounts for MXU default f32 precision + approx softmax recip.
    assert jnp.allclose(out, ref, atol=2e-4, rtol=2e-4), (
        f"f32 max abs err {jnp.max(jnp.abs(out - ref))}")

    # bf16 MXU path (v6e/v7x): bf16 weights/matmul inputs, f32 accumulation.
    out_bf16 = jax.block_until_ready(
        encoder_layer(x, mask, params, H, matmul_dtype=jnp.bfloat16))
    assert jnp.allclose(out_bf16, ref, atol=1e-2, rtol=1e-2), (
        f"bf16 max abs err {jnp.max(jnp.abs(out_bf16 - ref))}")

    print("KERNEL_OK")
</pallas_src>

<mosaic_0001>
module attributes {stable_mosaic.version = 11 : i64} {
  func.func @encoder_layer_kernel(%arg0: i32, %arg1: memref<1x8x32xf32, #tpu.memory_space<vmem>>, %arg2: memref<1x8x8xi8, #tpu.memory_space<vmem>>, %arg3: memref<32x32xf32, #tpu.memory_space<vmem>>, %arg4: memref<32x32xf32, #tpu.memory_space<vmem>>, %arg5: memref<32x32xf32, #tpu.memory_space<vmem>>, %arg6: memref<32x32xf32, #tpu.memory_space<vmem>>, %arg7: memref<1x32xf32, #tpu.memory_space<vmem>>, %arg8: memref<1x32xf32, #tpu.memory_space<vmem>>, %arg9: memref<32x64xf32, #tpu.memory_space<vmem>>, %arg10: memref<1x64xf32, #tpu.memory_space<vmem>>, %arg11: memref<64x32xf32, #tpu.memory_space<vmem>>, %arg12: memref<1x32xf32, #tpu.memory_space<vmem>>, %arg13: memref<1x32xf32, #tpu.memory_space<vmem>>, %arg14: memref<1x32xf32, #tpu.memory_space<vmem>>, %arg15: memref<1x8x32xf32, #tpu.memory_space<vmem>>) attributes {dimension_semantics = [#tpu.dimension_semantics<parallel>], iteration_bounds = array<i64: 2>, scalar_prefetch = 0 : i64, scratch_operands = 0 : i64, tpu.core_type = #tpu.core_type<tc>, window_params = [{transform_indices = @transform_0, window_bounds = array<i64: 1, 8, 32>}, {transform_indices = @transform_1, window_bounds = array<i64: 1, 8, 8>}, {pipeline_mode = #tpu.pipeline_mode<synchronous>, transform_indices = @transform_2, window_bounds = array<i64: 32, 32>}, {pipeline_mode = #tpu.pipeline_mode<synchronous>, transform_indices = @transform_3, window_bounds = array<i64: 32, 32>}, {pipeline_mode = #tpu.pipeline_mode<synchronous>, transform_indices = @transform_4, window_bounds = array<i64: 32, 32>}, {pipeline_mode = #tpu.pipeline_mode<synchronous>, transform_indices = @transform_5, window_bounds = array<i64: 32, 32>}, {pipeline_mode = #tpu.pipeline_mode<synchronous>, transform_indices = @transform_6, window_bounds = array<i64: 1, 32>}, {pipeline_mode = #tpu.pipeline_mode<synchronous>, transform_indices = @transform_7, window_bounds = array<i64: 1, 32>}, {pipeline_mode = #tpu.pipeline_mode<synchronous>, transform_indices = @transform_8, window_bounds = array<i64: 32, 64>}, {pipeline_mode = #tpu.pipeline_mode<synchronous>, transform_indices = @transform_9, window_bounds = array<i64: 1, 64>}, {pipeline_mode = #tpu.pipeline_mode<synchronous>, transform_indices = @transform_10, window_bounds = array<i64: 64, 32>}, {pipeline_mode = #tpu.pipeline_mode<synchronous>, transform_indices = @transform_11, window_bounds = array<i64: 1, 32>}, {pipeline_mode = #tpu.pipeline_mode<synchronous>, transform_indices = @transform_12, window_bounds = array<i64: 1, 32>}, {pipeline_mode = #tpu.pipeline_mode<synchronous>, transform_indices = @transform_13, window_bounds = array<i64: 1, 32>}, {transform_indices = @transform_14, window_bounds = array<i64: 1, 8, 32>}]} {
    %c0 = arith.constant 0 : index
    %c0_0 = arith.constant 0 : index
    %c0_1 = arith.constant 0 : index
    %0 = vector.load %arg1[%c0, %c0_0, %c0_1] : memref<1x8x32xf32, #tpu.memory_space<vmem>>, vector<1x8x32xf32>
    %1 = vector.shape_cast %0 : vector<1x8x32xf32> to vector<8x32xf32>
    %c0_2 = arith.constant 0 : index
    %c0_3 = arith.constant 0 : index
    %c0_4 = arith.constant 0 : index
    %2 = vector.load %arg2[%c0_2, %c0_3, %c0_4] : memref<1x8x8xi8, #tpu.memory_space<vmem>>, vector<1x8x8xi8>
    %3 = vector.shape_cast %2 : vector<1x8x8xi8> to vector<8x8xi8>
    %c0_i8 = arith.constant 0 : i8
    %4 = vector.broadcast %c0_i8 : i8 to vector<8x8xi8>
    %5 = arith.cmpi ne, %3, %4 : vector<8x8xi8>
    %c0_5 = arith.constant 0 : index
    %c0_6 = arith.constant 0 : index
    %6 = vector.load %arg3[%c0_5, %c0_6] : memref<32x32xf32, #tpu.memory_space<vmem>>, vector<32x32xf32>
    %cst = arith.constant dense<0.000000e+00> : vector<8x32xf32>
    %7 = tpu.matmul %1, %6, %cst {dimension_numbers = #tpu.dot_dimension_numbers<[1], [0], [0], [1], [0, 0, 1, 1], [], []>} : vector<8x32xf32>, vector<32x32xf32>, vector<8x32xf32> -> vector<8x32xf32>
    %c0_7 = arith.constant 0 : index
    %c0_8 = arith.constant 0 : index
    %8 = vector.load %arg4[%c0_7, %c0_8] : memref<32x32xf32, #tpu.memory_space<vmem>>, vector<32x32xf32>
    %cst_9 = arith.constant dense<0.000000e+00> : vector<8x32xf32>
    %9 = tpu.matmul %1, %8, %cst_9 {dimension_numbers = #tpu.dot_dimension_numbers<[1], [0], [0], [1], [0, 0, 1, 1], [], []>} : vector<8x32xf32>, vector<32x32xf32>, vector<8x32xf32> -> vector<8x32xf32>
    %c0_10 = arith.constant 0 : index
    %c0_11 = arith.constant 0 : index
    %10 = vector.load %arg5[%c0_10, %c0_11] : memref<32x32xf32, #tpu.memory_space<vmem>>, vector<32x32xf32>
    %cst_12 = arith.constant dense<0.000000e+00> : vector<8x32xf32>
    %11 = tpu.matmul %1, %10, %cst_12 {dimension_numbers = #tpu.dot_dimension_numbers<[1], [0], [0], [1], [0, 0, 1, 1], [], []>} : vector<8x32xf32>, vector<32x32xf32>, vector<8x32xf32> -> vector<8x32xf32>
    %cst_13 = arith.constant 0.000000e+00 : f32
    %12 = vector.broadcast %cst_13 : f32 to vector<8x32xf32>
    %13 = vector.extract_strided_slice %7 {offsets = [0, 0], sizes = [8, 8], strides = [1, 1]} : vector<8x32xf32> to vector<8x8xf32>
    %14 = vector.extract_strided_slice %9 {offsets = [0, 0], sizes = [8, 8], strides = [1, 1]} : vector<8x32xf32> to vector<8x8xf32>
    %15 = vector.extract_strided_slice %11 {offsets = [0, 0], sizes = [8, 8], strides = [1, 1]} : vector<8x32xf32> to vector<8x8xf32>
    "tpu.trace_start"() <{level = 10 : i32, message = "qd,kd->qk"}> : () -> ()
    %cst_14 = arith.constant dense<0.000000e+00> : vector<8x8xf32>
    %16 = tpu.matmul %13, %14, %cst_14 {dimension_numbers = #tpu.dot_dimension_numbers<[1], [1], [0], [0], [0, 0, 1, 0], [], []>} : vector<8x8xf32>, vector<8x8xf32>, vector<8x8xf32> -> vector<8x8xf32>
    "tpu.trace_stop"() : () -> ()
    %cst_15 = arith.constant 0.353553385 : f32
    %17 = vector.broadcast %cst_15 : f32 to vector<8x8xf32>
    %18 = arith.mulf %16, %17 : vector<8x8xf32>
    %cst_16 = arith.constant -1.000000e+30 : f32
    %19 = vector.broadcast %cst_16 : f32 to vector<8x8xf32>
    %20 = arith.select %5, %19, %18 : vector<8x8xi1>, vector<8x8xf32>
    %cst_17 = arith.constant dense<0xFF800000> : vector<8xf32>
    %21 = vector.multi_reduction <maximumf>, %20, %cst_17 [1] : vector<8x8xf32> to vector<8xf32>
    %22 = vector.shape_cast %21 : vector<8xf32> to vector<8x1xf32>
    %23 = vector.broadcast %22 : vector<8x1xf32> to vector<8x8xf32>
    %24 = arith.subf %20, %23 : vector<8x8xf32>
    %25 = math.exp %24 : vector<8x8xf32>
    %cst_18 = arith.constant dense<0.000000e+00> : vector<8xf32>
    %26 = vector.multi_reduction <add>, %25, %cst_18 [1] : vector<8x8xf32> to vector<8xf32>
    %27 = vector.shape_cast %26 : vector<8xf32> to vector<8x1xf32>
    %28 = tpu.reciprocal %27 {approx = true} : vector<8x1xf32> -> vector<8x1xf32>
    %29 = vector.broadcast %28 : vector<8x1xf32> to vector<8x8xf32>
    %30 = arith.mulf %25, %29 : vector<8x8xf32>
    %cst_19 = arith.constant dense<0.000000e+00> : vector<8x8xf32>
    %31 = tpu.matmul %30, %15, %cst_19 {dimension_numbers = #tpu.dot_dimension_numbers<[1], [0], [0], [1], [0, 0, 1, 1], [], []>} : vector<8x8xf32>, vector<8x8xf32>, vector<8x8xf32> -> vector<8x8xf32>
    %c0_20 = arith.constant 0 : index
    %c0_21 = arith.constant 0 : index
    %32 = vector.load %arg6[%c0_20, %c0_21] : memref<32x32xf32, #tpu.memory_space<vmem>>, vector<8x32xf32>
    %cst_22 = arith.constant dense<0.000000e+00> : vector<8x32xf32>
    %33 = tpu.matmul %31, %32, %cst_22 {dimension_numbers = #tpu.dot_dimension_numbers<[1], [0], [0], [1], [0, 0, 1, 1], [], []>} : vector<8x8xf32>, vector<8x32xf32>, vector<8x32xf32> -> vector<8x32xf32>
    %34 = arith.addf %12, %33 : vector<8x32xf32>
    %35 = vector.extract_strided_slice %7 {offsets = [0, 8], sizes = [8, 8], strides = [1, 1]} : vector<8x32xf32> to vector<8x8xf32>
    %36 = vector.extract_strided_slice %9 {offsets = [0, 8], sizes = [8, 8], strides = [1, 1]} : vector<8x32xf32> to vector<8x8xf32>
    %37 = vector.extract_strided_slice %11 {offsets = [0, 8], sizes = [8, 8], strides = [1, 1]} : vector<8x32xf32> to vector<8x8xf32>
    "tpu.trace_start"() <{level = 10 : i32, message = "qd,kd->qk"}> : () -> ()
    %cst_23 = arith.constant dense<0.000000e+00> : vector<8x8xf32>
    %38 = tpu.matmul %35, %36, %cst_23 {dimension_numbers = #tpu.dot_dimension_numbers<[1], [1], [0], [0], [0, 0, 1, 0], [], []>} : vector<8x8xf32>, vector<8x8xf32>, vector<8x8xf32> -> vector<8x8xf32>
    "tpu.trace_stop"() : () -> ()
    %cst_24 = arith.constant 0.353553385 : f32
    %39 = vector.broadcast %cst_24 : f32 to vector<8x8xf32>
    %40 = arith.mulf %38, %39 : vector<8x8xf32>
    %cst_25 = arith.constant -1.000000e+30 : f32
    %41 = vector.broadcast %cst_25 : f32 to vector<8x8xf32>
    %42 = arith.select %5, %41, %40 : vector<8x8xi1>, vector<8x8xf32>
    %cst_26 = arith.constant dense<0xFF800000> : vector<8xf32>
    %43 = vector.multi_reduction <maximumf>, %42, %cst_26 [1] : vector<8x8xf32> to vector<8xf32>
    %44 = vector.shape_cast %43 : vector<8xf32> to vector<8x1xf32>
    %45 = vector.broadcast %44 : vector<8x1xf32> to vector<8x8xf32>
    %46 = arith.subf %42, %45 : vector<8x8xf32>
    %47 = math.exp %46 : vector<8x8xf32>
    %cst_27 = arith.constant dense<0.000000e+00> : vector<8xf32>
    %48 = vector.multi_reduction <add>, %47, %cst_27 [1] : vector<8x8xf32> to vector<8xf32>
    %49 = vector.shape_cast %48 : vector<8xf32> to vector<8x1xf32>
    %50 = tpu.reciprocal %49 {approx = true} : vector<8x1xf32> -> vector<8x1xf32>
    %51 = vector.broadcast %50 : vector<8x1xf32> to vector<8x8xf32>
    %52 = arith.mulf %47, %51 : vector<8x8xf32>
    %cst_28 = arith.constant dense<0.000000e+00> : vector<8x8xf32>
    %53 = tpu.matmul %52, %37, %cst_28 {dimension_numbers = #tpu.dot_dimension_numbers<[1], [0], [0], [1], [0, 0, 1, 1], [], []>} : vector<8x8xf32>, vector<8x8xf32>, vector<8x8xf32> -> vector<8x8xf32>
    %c8 = arith.constant 8 : index
    %c0_29 = arith.constant 0 : index
    %54 = vector.load %arg6[%c8, %c0_29] : memref<32x32xf32, #tpu.memory_space<vmem>>, vector<8x32xf32>
    %cst_30 = arith.constant dense<0.000000e+00> : vector<8x32xf32>
    %55 = tpu.matmul %53, %54, %cst_30 {dimension_numbers = #tpu.dot_dimension_numbers<[1], [0], [0], [1], [0, 0, 1, 1], [], []>} : vector<8x8xf32>, vector<8x32xf32>, vector<8x32xf32> -> vector<8x32xf32>
    %56 = arith.addf %34, %55 : vector<8x32xf32>
    %57 = vector.extract_strided_slice %7 {offsets = [0, 16], sizes = [8, 8], strides = [1, 1]} : vector<8x32xf32> to vector<8x8xf32>
    %58 = vector.extract_strided_slice %9 {offsets = [0, 16], sizes = [8, 8], strides = [1, 1]} : vector<8x32xf32> to vector<8x8xf32>
    %59 = vector.extract_strided_slice %11 {offsets = [0, 16], sizes = [8, 8], strides = [1, 1]} : vector<8x32xf32> to vector<8x8xf32>
    "tpu.trace_start"() <{level = 10 : i32, message = "qd,kd->qk"}> : () -> ()
    %cst_31 = arith.constant dense<0.000000e+00> : vector<8x8xf32>
    %60 = tpu.matmul %57, %58, %cst_31 {dimension_numbers = #tpu.dot_dimension_numbers<[1], [1], [0], [0], [0, 0, 1, 0], [], []>} : vector<8x8xf32>, vector<8x8xf32>, vector<8x8xf32> -> vector<8x8xf32>
    "tpu.trace_stop"() : () -> ()
    %cst_32 = arith.constant 0.353553385 : f32
    %61 = vector.broadcast %cst_32 : f32 to vector<8x8xf32>
    %62 = arith.mulf %60, %61 : vector<8x8xf32>
    %cst_33 = arith.constant -1.000000e+30 : f32
    %63 = vector.broadcast %cst_33 : f32 to vector<8x8xf32>
    %64 = arith.select %5, %63, %62 : vector<8x8xi1>, vector<8x8xf32>
    %cst_34 = arith.constant dense<0xFF800000> : vector<8xf32>
    %65 = vector.multi_reduction <maximumf>, %64, %cst_34 [1] : vector<8x8xf32> to vector<8xf32>
    %66 = vector.shape_cast %65 : vector<8xf32> to vector<8x1xf32>
    %67 = vector.broadcast %66 : vector<8x1xf32> to vector<8x8xf32>
    %68 = arith.subf %64, %67 : vector<8x8xf32>
    %69 = math.exp %68 : vector<8x8xf32>
    %cst_35 = arith.constant dense<0.000000e+00> : vector<8xf32>
    %70 = vector.multi_reduction <add>, %69, %cst_35 [1] : vector<8x8xf32> to vector<8xf32>
    %71 = vector.shape_cast %70 : vector<8xf32> to vector<8x1xf32>
    %72 = tpu.reciprocal %71 {approx = true} : vector<8x1xf32> -> vector<8x1xf32>
    %73 = vector.broadcast %72 : vector<8x1xf32> to vector<8x8xf32>
    %74 = arith.mulf %69, %73 : vector<8x8xf32>
    %cst_36 = arith.constant dense<0.000000e+00> : vector<8x8xf32>
    %75 = tpu.matmul %74, %59, %cst_36 {dimension_numbers = #tpu.dot_dimension_numbers<[1], [0], [0], [1], [0, 0, 1, 1], [], []>} : vector<8x8xf32>, vector<8x8xf32>, vector<8x8xf32> -> vector<8x8xf32>
    %c16 = arith.constant 16 : index
    %c0_37 = arith.constant 0 : index
    %76 = vector.load %arg6[%c16, %c0_37] : memref<32x32xf32, #tpu.memory_space<vmem>>, vector<8x32xf32>
    %cst_38 = arith.constant dense<0.000000e+00> : vector<8x32xf32>
    %77 = tpu.matmul %75, %76, %cst_38 {dimension_numbers = #tpu.dot_dimension_numbers<[1], [0], [0], [1], [0, 0, 1, 1], [], []>} : vector<8x8xf32>, vector<8x32xf32>, vector<8x32xf32> -> vector<8x32xf32>
    %78 = arith.addf %56, %77 : vector<8x32xf32>
    %79 = vector.extract_strided_slice %7 {offsets = [0, 24], sizes = [8, 8], strides = [1, 1]} : vector<8x32xf32> to vector<8x8xf32>
    %80 = vector.extract_strided_slice %9 {offsets = [0, 24], sizes = [8, 8], strides = [1, 1]} : vector<8x32xf32> to vector<8x8xf32>
    %81 = vector.extract_strided_slice %11 {offsets = [0, 24], sizes = [8, 8], strides = [1, 1]} : vector<8x32xf32> to vector<8x8xf32>
    "tpu.trace_start"() <{level = 10 : i32, message = "qd,kd->qk"}> : () -> ()
    %cst_39 = arith.constant dense<0.000000e+00> : vector<8x8xf32>
    %82 = tpu.matmul %79, %80, %cst_39 {dimension_numbers = #tpu.dot_dimension_numbers<[1], [1], [0], [0], [0, 0, 1, 0], [], []>} : vector<8x8xf32>, vector<8x8xf32>, vector<8x8xf32> -> vector<8x8xf32>
    "tpu.trace_stop"() : () -> ()
    %cst_40 = arith.constant 0.353553385 : f32
    %83 = vector.broadcast %cst_40 : f32 to vector<8x8xf32>
    %84 = arith.mulf %82, %83 : vector<8x8xf32>
    %cst_41 = arith.constant -1.000000e+30 : f32
    %85 = vector.broadcast %cst_41 : f32 to vector<8x8xf32>
    %86 = arith.select %5, %85, %84 : vector<8x8xi1>, vector<8x8xf32>
    %cst_42 = arith.constant dense<0xFF800000> : vector<8xf32>
    %87 = vector.multi_reduction <maximumf>, %86, %cst_42 [1] : vector<8x8xf32> to vector<8xf32>
    %88 = vector.shape_cast %87 : vector<8xf32> to vector<8x1xf32>
    %89 = vector.broadcast %88 : vector<8x1xf32> to vector<8x8xf32>
    %90 = arith.subf %86, %89 : vector<8x8xf32>
    %91 = math.exp %90 : vector<8x8xf32>
    %cst_43 = arith.constant dense<0.000000e+00> : vector<8xf32>
    %92 = vector.multi_reduction <add>, %91, %cst_43 [1] : vector<8x8xf32> to vector<8xf32>
    %93 = vector.shape_cast %92 : vector<8xf32> to vector<8x1xf32>
    %94 = tpu.reciprocal %93 {approx = true} : vector<8x1xf32> -> vector<8x1xf32>
    %95 = vector.broadcast %94 : vector<8x1xf32> to vector<8x8xf32>
    %96 = arith.mulf %91, %95 : vector<8x8xf32>
    %cst_44 = arith.constant dense<0.000000e+00> : vector<8x8xf32>
    %97 = tpu.matmul %96, %81, %cst_44 {dimension_numbers = #tpu.dot_dimension_numbers<[1], [0], [0], [1], [0, 0, 1, 1], [], []>} : vector<8x8xf32>, vector<8x8xf32>, vector<8x8xf32> -> vector<8x8xf32>
    %c24 = arith.constant 24 : index
    %c0_45 = arith.constant 0 : index
    %98 = vector.load %arg6[%c24, %c0_45] : memref<32x32xf32, #tpu.memory_space<vmem>>, vector<8x32xf32>
    %cst_46 = arith.constant dense<0.000000e+00> : vector<8x32xf32>
    %99 = tpu.matmul %97, %98, %cst_46 {dimension_numbers = #tpu.dot_dimension_numbers<[1], [0], [0], [1], [0, 0, 1, 1], [], []>} : vector<8x8xf32>, vector<8x32xf32>, vector<8x32xf32> -> vector<8x32xf32>
    %100 = arith.addf %78, %99 : vector<8x32xf32>
    %101 = arith.addf %100, %1 : vector<8x32xf32>
    %c0_47 = arith.constant 0 : index
    %c0_48 = arith.constant 0 : index
    %102 = vector.load %arg7[%c0_47, %c0_48] : memref<1x32xf32, #tpu.memory_space<vmem>>, vector<1x32xf32>
    %c0_49 = arith.constant 0 : index
    %c0_50 = arith.constant 0 : index
    %103 = vector.load %arg8[%c0_49, %c0_50] : memref<1x32xf32, #tpu.memory_space<vmem>>, vector<1x32xf32>
    %cst_51 = arith.constant dense<0.000000e+00> : vector<8xf32>
    %104 = vector.multi_reduction <add>, %101, %cst_51 [1] : vector<8x32xf32> to vector<8xf32>
    %105 = vector.shape_cast %104 : vector<8xf32> to vector<8x1xf32>
    %cst_52 = arith.constant 3.200000e+01 : f32
    %106 = vector.broadcast %cst_52 : f32 to vector<8x1xf32>
    %107 = arith.divf %105, %106 : vector<8x1xf32>
    %108 = vector.broadcast %107 : vector<8x1xf32> to vector<8x32xf32>
    %109 = arith.subf %101, %108 : vector<8x32xf32>
    %110 = arith.mulf %109, %109 : vector<8x32xf32>
    %cst_53 = arith.constant dense<0.000000e+00> : vector<8xf32>
    %111 = vector.multi_reduction <add>, %110, %cst_53 [1] : vector<8x32xf32> to vector<8xf32>
    %112 = vector.shape_cast %111 : vector<8xf32> to vector<8x1xf32>
    %cst_54 = arith.constant 0.0322580636 : f32
    %113 = vector.broadcast %cst_54 : f32 to vector<8x1xf32>
    %114 = arith.mulf %112, %113 : vector<8x1xf32>
    %115 = math.sqrt %114 : vector<8x1xf32>
    %cst_55 = arith.constant 9.99999997E-7 : f32
    %116 = vector.broadcast %cst_55 : f32 to vector<8x1xf32>
    %117 = arith.maximumf %115, %116 : vector<8x1xf32>
    %cst_56 = arith.constant 1.000000e+00 : f32
    %118 = vector.broadcast %cst_56 : f32 to vector<8x1xf32>
    %119 = arith.divf %118, %117 : vector<8x1xf32>
    %120 = vector.broadcast %119 : vector<8x1xf32> to vector<8x32xf32>
    %121 = arith.mulf %109, %120 : vector<8x32xf32>
    %122 = vector.broadcast %102 : vector<1x32xf32> to vector<8x32xf32>
    %123 = arith.mulf %121, %122 : vector<8x32xf32>
    %124 = vector.broadcast %103 : vector<1x32xf32> to vector<8x32xf32>
    %125 = arith.addf %123, %124 : vector<8x32xf32>
    %c0_57 = arith.constant 0 : index
    %c0_58 = arith.constant 0 : index
    %126 = vector.load %arg9[%c0_57, %c0_58] : memref<32x64xf32, #tpu.memory_space<vmem>>, vector<32x64xf32>
    %cst_59 = arith.constant dense<0.000000e+00> : vector<8x64xf32>
    %127 = tpu.matmul %125, %126, %cst_59 {dimension_numbers = #tpu.dot_dimension_numbers<[1], [0], [0], [1], [0, 0, 1, 1], [], []>} : vector<8x32xf32>, vector<32x64xf32>, vector<8x64xf32> -> vector<8x64xf32>
    %c0_60 = arith.constant 0 : index
    %c0_61 = arith.constant 0 : index
    %128 = vector.load %arg10[%c0_60, %c0_61] : memref<1x64xf32, #tpu.memory_space<vmem>>, vector<1x64xf32>
    %129 = vector.broadcast %128 : vector<1x64xf32> to vector<8x64xf32>
    %130 = arith.addf %127, %129 : vector<8x64xf32>
    %cst_62 = arith.constant 5.000000e-01 : f32
    %131 = vector.broadcast %cst_62 : f32 to vector<8x64xf32>
    %132 = arith.mulf %130, %131 : vector<8x64xf32>
    %cst_63 = arith.constant 0.707106769 : f32
    %133 = vector.broadcast %cst_63 : f32 to vector<8x64xf32>
    %134 = arith.mulf %130, %133 : vector<8x64xf32>
    %135 = math.erf %134 : vector<8x64xf32>
    %cst_64 = arith.constant 1.000000e+00 : f32
    %136 = vector.broadcast %cst_64 : f32 to vector<8x64xf32>
    %137 = arith.addf %136, %135 : vector<8x64xf32>
    %138 = arith.mulf %132, %137 : vector<8x64xf32>
    %c0_65 = arith.constant 0 : index
    %c0_66 = arith.constant 0 : index
    %139 = vector.load %arg11[%c0_65, %c0_66] : memref<64x32xf32, #tpu.memory_space<vmem>>, vector<64x32xf32>
    %cst_67 = arith.constant dense<0.000000e+00> : vector<8x32xf32>
    %140 = tpu.matmul %138, %139, %cst_67 {dimension_numbers = #tpu.dot_dimension_numbers<[1], [0], [0], [1], [0, 0, 1, 1], [], []>} : vector<8x64xf32>, vector<64x32xf32>, vector<8x32xf32> -> vector<8x32xf32>
    %c0_68 = arith.constant 0 : index
    %c0_69 = arith.constant 0 : index
    %141 = vector.load %arg12[%c0_68, %c0_69] : memref<1x32xf32, #tpu.memory_space<vmem>>, vector<1x32xf32>
    %142 = vector.broadcast %141 : vector<1x32xf32> to vector<8x32xf32>
    %143 = arith.addf %140, %142 : vector<8x32xf32>
    %144 = arith.addf %125, %143 : vector<8x32xf32>
    %c0_70 = arith.constant 0 : index
    %c0_71 = arith.constant 0 : index
    %145 = vector.load %arg13[%c0_70, %c0_71] : memref<1x32xf32, #tpu.memory_space<vmem>>, vector<1x32xf32>
    %c0_72 = arith.constant 0 : index
    %c0_73 = arith.constant 0 : index
    %146 = vector.load %arg14[%c0_72, %c0_73] : memref<1x32xf32, #tpu.memory_space<vmem>>, vector<1x32xf32>
    %cst_74 = arith.constant dense<0.000000e+00> : vector<8xf32>
    %147 = vector.multi_reduction <add>, %144, %cst_74 [1] : vector<8x32xf32> to vector<8xf32>
    %148 = vector.shape_cast %147 : vector<8xf32> to vector<8x1xf32>
    %cst_75 = arith.constant 3.200000e+01 : f32
    %149 = vector.broadcast %cst_75 : f32 to vector<8x1xf32>
    %150 = arith.divf %148, %149 : vector<8x1xf32>
    %151 = vector.broadcast %150 : vector<8x1xf32> to vector<8x32xf32>
    %152 = arith.subf %144, %151 : vector<8x32xf32>
    %153 = arith.mulf %152, %152 : vector<8x32xf32>
    %cst_76 = arith.constant dense<0.000000e+00> : vector<8xf32>
    %154 = vector.multi_reduction <add>, %153, %cst_76 [1] : vector<8x32xf32> to vector<8xf32>
    %155 = vector.shape_cast %154 : vector<8xf32> to vector<8x1xf32>
    %cst_77 = arith.constant 0.0322580636 : f32
    %156 = vector.broadcast %cst_77 : f32 to vector<8x1xf32>
    %157 = arith.mulf %155, %156 : vector<8x1xf32>
    %158 = math.sqrt %157 : vector<8x1xf32>
    %cst_78 = arith.constant 9.99999997E-7 : f32
    %159 = vector.broadcast %cst_78 : f32 to vector<8x1xf32>
    %160 = arith.maximumf %158, %159 : vector<8x1xf32>
    %cst_79 = arith.constant 1.000000e+00 : f32
    %161 = vector.broadcast %cst_79 : f32 to vector<8x1xf32>
    %162 = arith.divf %161, %160 : vector<8x1xf32>
    %163 = vector.broadcast %162 : vector<8x1xf32> to vector<8x32xf32>
    %164 = arith.mulf %152, %163 : vector<8x32xf32>
    %165 = vector.broadcast %145 : vector<1x32xf32> to vector<8x32xf32>
    %166 = arith.mulf %164, %165 : vector<8x32xf32>
    %167 = vector.broadcast %146 : vector<1x32xf32> to vector<8x32xf32>
    %168 = arith.addf %166, %167 : vector<8x32xf32>
    %c0_80 = arith.constant 0 : index
    %c0_81 = arith.constant 0 : index
    %c0_82 = arith.constant 0 : index
    %169 = vector.load %arg15[%c0_80, %c0_81, %c0_82] : memref<1x8x32xf32, #tpu.memory_space<vmem>>, vector<1x8x32xf32>
    %170 = vector.shape_cast %169 : vector<1x8x32xf32> to vector<8x32xf32>
    %171 = vector.shape_cast %168 : vector<8x32xf32> to vector<1x8x32xf32>
    tpu.vector_store %arg15[%c0_80, %c0_81, %c0_82], %171 {strides = array<i32>} : memref<1x8x32xf32, #tpu.memory_space<vmem>>, vector<1x8x32xf32>,
    return
  }
  func.func @transform_0(%arg0: i32) -> (i32, i32, i32) {
    %c0_i32 = arith.constant 0 : i32
    %c0_i32_0 = arith.constant 0 : i32
    %c0_i32_1 = arith.constant 0 : i32
    return %arg0, %c0_i32, %c0_i32_0 : i32, i32, i32
  }
  func.func @transform_1(%arg0: i32) -> (i32, i32, i32) {
    %c0_i32 = arith.constant 0 : i32
    %c0_i32_0 = arith.constant 0 : i32
    %c0_i32_1 = arith.constant 0 : i32
    return %arg0, %c0_i32, %c0_i32_0 : i32, i32, i32
  }
  func.func @transform_2(%arg0: i32) -> (i32, i32) {
    %c0_i32 = arith.constant 0 : i32
    %c0_i32_0 = arith.constant 0 : i32
    %c0_i32_1 = arith.constant 0 : i32
    return %c0_i32, %c0_i32_0 : i32, i32
  }
  func.func @transform_3(%arg0: i32) -> (i32, i32) {
    %c0_i32 = arith.constant 0 : i32
    %c0_i32_0 = arith.constant 0 : i32
    %c0_i32_1 = arith.constant 0 : i32
    return %c0_i32, %c0_i32_0 : i32, i32
  }
  func.func @transform_4(%arg0: i32) -> (i32, i32) {
    %c0_i32 = arith.constant 0 : i32
    %c0_i32_0 = arith.constant 0 : i32
    %c0_i32_1 = arith.constant 0 : i32
    return %c0_i32, %c0_i32_0 : i32, i32
  }
  func.func @transform_5(%arg0: i32) -> (i32, i32) {
    %c0_i32 = arith.constant 0 : i32
    %c0_i32_0 = arith.constant 0 : i32
    %c0_i32_1 = arith.constant 0 : i32
    return %c0_i32, %c0_i32_0 : i32, i32
  }
  func.func @transform_6(%arg0: i32) -> (i32, i32) {
    %c0_i32 = arith.constant 0 : i32
    %c0_i32_0 = arith.constant 0 : i32
    %c0_i32_1 = arith.constant 0 : i32
    return %c0_i32, %c0_i32_0 : i32, i32
  }
  func.func @transform_7(%arg0: i32) -> (i32, i32) {
    %c0_i32 = arith.constant 0 : i32
    %c0_i32_0 = arith.constant 0 : i32
    %c0_i32_1 = arith.constant 0 : i32
    return %c0_i32, %c0_i32_0 : i32, i32
  }
  func.func @transform_8(%arg0: i32) -> (i32, i32) {
    %c0_i32 = arith.constant 0 : i32
    %c0_i32_0 = arith.constant 0 : i32
    %c0_i32_1 = arith.constant 0 : i32
    return %c0_i32, %c0_i32_0 : i32, i32
  }
  func.func @transform_9(%arg0: i32) -> (i32, i32) {
    %c0_i32 = arith.constant 0 : i32
    %c0_i32_0 = arith.constant 0 : i32
    %c0_i32_1 = arith.constant 0 : i32
    return %c0_i32, %c0_i32_0 : i32, i32
  }
  func.func @transform_10(%arg0: i32) -> (i32, i32) {
    %c0_i32 = arith.constant 0 : i32
    %c0_i32_0 = arith.constant 0 : i32
    %c0_i32_1 = arith.constant 0 : i32
    return %c0_i32, %c0_i32_0 : i32, i32
  }
  func.func @transform_11(%arg0: i32) -> (i32, i32) {
    %c0_i32 = arith.constant 0 : i32
    %c0_i32_0 = arith.constant 0 : i32
    %c0_i32_1 = arith.constant 0 : i32
    return %c0_i32, %c0_i32_0 : i32, i32
  }
  func.func @transform_12(%arg0: i32) -> (i32, i32) {
    %c0_i32 = arith.constant 0 : i32
    %c0_i32_0 = arith.constant 0 : i32
    %c0_i32_1 = arith.constant 0 : i32
    return %c0_i32, %c0_i32_0 : i32, i32
  }
  func.func @transform_13(%arg0: i32) -> (i32, i32) {
    %c0_i32 = arith.constant 0 : i32
    %c0_i32_0 = arith.constant 0 : i32
    %c0_i32_1 = arith.constant 0 : i32
    return %c0_i32, %c0_i32_0 : i32, i32
  }
  func.func @transform_14(%arg0: i32) -> (i32, i32, i32) {
    %c0_i32 = arith.constant 0 : i32
    %c0_i32_0 = arith.constant 0 : i32
    %c0_i32_1 = arith.constant 0 : i32
    return %arg0, %c0_i32, %c0_i32_0 : i32, i32, i32
  }
}

</mosaic_0001>

<bundles_post_ra>
// kernel: tpu_custom_call.1
= control target key start
LH: loop header
LB: loop body
LE: loop exit
PB: predicated region body
PF: predicated region fallthrough
CT: control target
= control target key end

     0   :  { %s3184_s0 = inlined_call_operand.hbm [shape: f32[2,8,32], index: 0, kind: input, shape index: {}]   ;;  %s3185_s1 = inlined_call_operand.hbm [shape: s8[2,8,8], index: 1, kind: input, shape index: {}]   ;;  %s3186_s2 = inlined_call_operand.vmem [shape: f32[32,32], index: 2, kind: input, shape index: {}]   ;;  %s3187_s3 = inlined_call_operand.vmem [shape: f32[32,32], index: 3, kind: input, shape index: {}]   ;;  %s3188_s4 = inlined_call_operand.vmem [shape: f32[32,32], index: 4, kind: input, shape index: {}]   ;;  %s3189_s5 = inlined_call_operand.hbm [shape: f32[32,32], index: 5, kind: input, shape index: {}]   ;;  %s3190_s6 = inlined_call_operand.vmem [shape: f32[1,32], index: 6, kind: input, shape index: {}]   ;;  %s3191_s7 = inlined_call_operand.vmem [shape: f32[1,32], index: 7, kind: input, shape index: {}]   ;;  %s3192_s8 = inlined_call_operand.hbm [shape: f32[32,64], index: 8, kind: input, shape index: {}]   ;;  %s3193_s9 = inlined_call_operand.vmem [shape: f32[1,64], index: 9, kind: input, shape index: {}]   ;;  %s3194_s10 = inlined_call_operand.vmem [shape: f32[64,32], index: 10, kind: input, shape index: {}]   ;;  %s3195_s11 = inlined_call_operand.vmem [shape: f32[1,32], index: 11, kind: input, shape index: {}]   ;;  %s3196_s12 = inlined_call_operand.vmem [shape: f32[1,32], index: 12, kind: input, shape index: {}]   ;;  %s3197_s13 = inlined_call_operand.vmem [shape: f32[1,32], index: 13, kind: input, shape index: {}]   ;;  %s3198_s14 = inlined_call_operand.hbm [shape: f32[2,8,32], index: 14, kind: output, shape index: {}]  }
   0x1   :  { %3209 = sst [smem:[#allocation21_spill]] %s3184_s0 }
   0x2   :  { %3210 = sst [smem:[#allocation22_spill]] %s3189_s5 }
   0x3   :  { %3211 = sst [smem:[#allocation23_spill]] %s3192_s8 }
   0x4   :  { %3212 = sst [smem:[#allocation24_spill]] %s3197_s13 }
   0x5   :  { %3213 = sst [smem:[#allocation25_spill]] %s3198_s14 }
   0x6   :  { %19 = vsyncpa [#allocation3], 0 }
   0x7   :  { %21 = vsyncpa [#allocation3 + $0x1], 0 }
   0x8   :  { %22 = vsyncpa [#allocation6], 0 }
   0x9   :  { %24 = vsyncpa [#allocation6 + $0x1], 0 }
   0xa   :  { %25 = vsyncpa [#allocation9], 0 }
   0xb   :  { %26 = vsyncpa [#allocation4], 0 }
   0xc   :  { %28 = vsyncpa [#allocation4 + $0x1], 0  ;;  %s2730_s29 = smov 0   ;;  %s2732_s30 = smov 0  }
   0xd   :  { %s2734_s15 = smov 0   ;;  %s2736_s16 = smov 0  }
   0xe LB: > { %3214 = sst [smem:[#allocation16_spill]] %s2628_s29  ;;  %s2751_s17 = sadd.s32 4294967295, %s2640_s16   ;;  %s2640_s16 = sphi %s2736_s16, %s3246_s16   ;;  %s2636_s15 = sphi %s2734_s15, %s3248_s15   ;;  %s2632_s30 = sphi %s2732_s30, %s3250_s30   ;;  %s2628_s29 = sphi %s2730_s29, %s3249_s29  }
   0xf   : > { %3215 = sst [smem:[#allocation17_spill]] %s2636_s15  ;;  %s2128_s18 = sadd.s32 4294967294, %s2640_s16  }
  0x10   : > { %p54_p0 = scmp.ne.s32.totalorder %s2632_s30, %s2628_s29  ;;  %p3200_p1 = scmp.eq.s32.totalorder %s2751_s17, 0 }
  0x11   : > { %p362_p3 = scmp.eq.s32.totalorder %s2128_s18, 1  ;;  %p2129_p5 = scmp.ge.s32.totalorder %s2640_s16, 1 }
  0x12   : > { %p2760_p4 = por %p3200_p1, %p54_p0  ;;  %p369_p7 = scmp.lt.s32.totalorder %s2640_s16, 3 }
  0x13   : > { %p2765_p6 = por %p362_p3, %p54_p0  ;;  %s2642_s22 = smov [#allocation7]  }
  0x14   : > { %s3216_s19 = scalar_select %p2760_p4, 1, 0 }
  0x15   : > { %s3217_s20 = scalar_select %p2765_p6, 1, 0 }
  0x16   : > { %p2770_p8 = pnand %p2129_p5, %p369_p7  ;;  %s390_s23 = sshll.u32 %s2642_s22, 4  ;;  %s391_s23 = int_to_ptr.vmem [resolvable:$true] %s390_s23 }
  0x17   : > { %3218 = sst [smem:[#allocation18_spill]] %s3217_s20  ;;  %s2643_s25 = smov [#allocation8]  }
  0x18   : > { %s3219_s21 = scalar_select %p2770_p8, 1, 0 }
  0x19   : > { %p2364_p9 = pneg %p2770_p8  ;;  %s409_s26 = sshll.u32 %s2643_s25, 4  ;;  %s410_s26 = int_to_ptr.vmem [resolvable:$true] %s409_s26 }
  0x1a   : > { %s2467_s27 = scalar_lea.vmem %s391_s23, 512  ;;  %p2475_p5 = scmp.lt.s32.totalorder %s391_s23, %s391_s23 }
  0x1b   : > { %p2779_p11 = pnand %p2364_p9, %p3200_p1  ;;  %p2468_p13 = scmp.ne.s32.totalorder %s391_s23, %s2467_s27 }
  0x1c   : > { %p2476_p7 = scmp.lt.s32.totalorder %s2467_s27, %s2467_s27 }
  0x1d   : > { %p2458_p12 = pneg %p2779_p11 }
  0x1e   : > { %p2477_p10 = por %p2476_p7, %p2475_p5 }
  0x1f   : > { %p2470_p0 = pnand %p2468_p13, %p2458_p12 }
  0x21   : > { %p2471_p3 = pneg %p2470_p0 }
  0x23   : > { %p2478_p9 = pnand %p2477_p10, %p2471_p3 }
  0x25   : > { %2481 = shalt.err (!%p2478_p9)
}
  0x26   : > { %s2644_s28 = smov 128   ;;  %s2645_s18 = smov 8  }
  0x27   : > { %s3221_s5 = sld [smem:[#allocation22_spill]]  ;;  %s2493_s20 = scalar_lea.vmem %s410_s26, 512 }
  0x28   : > { %p2494_p1 = scmp.ne.s32.totalorder %s410_s26, %s2493_s20  ;;  %p2501_p2 = scmp.lt.s32.totalorder %s410_s26, %s410_s26 }
  0x29   : > { %p2502_p6 = scmp.lt.s32.totalorder %s2493_s20, %s2493_s20 }
  0x2a   : > { %p2496_p13 = pnand %p2494_p1, %p2458_p12 }
  0x2b   : > { %p2503_p5 = por %p2502_p6, %p2501_p2 }
  0x2c   : > { %p2497_p0 = pneg %p2496_p13 }
  0x2d   : > { %2367 = dma.hbm_to_vmem [thread:$0]  (!%p2779_p11), %s3221_s5, 512, %s391_s23, [#allocation6], %s2644_s28, %s2644_s28, %s2645_s18  }
  0x2e   : > { %p2504_p10 = pnand %p2503_p5, %p2497_p0 }
  0x30   : > { %2507 = shalt.err (!%p2504_p10)
}
  0x31   : > { %s3222_s8 = sld [smem:[#allocation23_spill]]  ;;  %s2802_s20 = sadd.s32 1, %s2640_s16  }
  0x32   : > { %3223 = sst [smem:[#allocation19_spill]] %s2802_s20  ;;  %s41_s23 = sadd.s32 1, %s2636_s15 }
  0x33   : > { %s38_s24 = ssub.s32 %s2640_s16, %s2802_s20  ;;  %p48_p1 = scmp.ne.s32.totalorder %s2636_s15, %s2632_s30 }
  0x34   : > { %p39_p2 = scmp.eq.s32.totalorder %s38_s24, 0  ;;  %p49_p6 = scmp.eq.s32.totalorder %s2640_s16, 0 }
  0x35   : > { %p3224_p12 = scmp.eq.s32.totalorder %s2751_s17, 1  ;;  %p2384_p7 = scmp.lt.s32.totalorder %s2640_s16, 2 }
  0x36   : > { %s2818_s22 = scalar_select %p39_p2, %s2636_s15, %s41_s23  }
  0x37   : > { %2370 = dma.hbm_to_vmem [thread:$0]  (!%p2779_p11), %s3222_s8, 512, %s410_s26, [#allocation9], %s2644_s28, %s2644_s28, %s2645_s18  }
  0x38   : > { %p2812_p3 = por %p3224_p12, %p48_p1  ;;  %3226 = sst [smem:[#allocation20_spill]] %s2818_s22 }
  0x39   : > { %p50_p9 = por %p49_p6, %p48_p1  ;;  %s2821_s25 = sand.u32 1, %s2636_s15  }
  0x3a   : > { %s3225_s29 = scalar_select %p2812_p3, 1, 0 }
  0x3b   : > { %s2133_s26 = sshll.u32 %s2821_s25, 3  ;;  %s2134_s28 = sshll.u32 %s2640_s16, 7 }
  0x3c   : > { %s3227_s0 = sld [smem:[#allocation21_spill]]  ;;  %s442_s5 = scalar_lea.vmem [#allocation2], %s2133_s26 }
  0x3d   : > { %s449_s8 = sshll.u32 %s442_s5, 4  ;;  %p2832_p11 = pnand %p2384_p7, %p50_p9  ;;  %s2830_s8 = int_to_ptr.vmem [resolvable:$true] %s449_s8 }
  0x3e   : > { %s439_s20 = scalar_lea.sflag [#allocation3], %s2821_s25 }
  0x3f   : > { %p2510_p0 = pneg %p2832_p11 }
  0x42   : > { %s2828_s24 = scalar_lea.hbm %s3227_s0, %s2134_s28  ;;  %s2513_s28 = scalar_lea.hbm %s3227_s0, 256 }
  0x43   : > { %s2508_s14 = scalar_lea.hbm %s2828_s24, 128  ;;  %p2514_p1 = scmp.lt.s32.totalorder %s2828_s24, %s3227_s0 }
  0x44   : > { %p2509_p13 = scmp.ne.s32.totalorder %s2828_s24, %s2508_s14  ;;  %p2515_p2 = scmp.lt.s32.totalorder %s2513_s28, %s2508_s14 }
  0x46   : > { %p2511_p5 = pnand %p2510_p0, %p2509_p13  ;;  %p2516_p6 = por %p2515_p2, %p2514_p1 }
  0x48   : > { %p2512_p10 = pneg %p2511_p5 }
  0x4a   : > { %p2517_p12 = pnand %p2516_p6, %p2512_p10 }
  0x4c   : > { %2520 = shalt.err (!%p2517_p12)
}
  0x4d   : > { %s2521_s22 = scalar_lea.vmem %s2830_s8, 128  ;;  %s2646_s5 = smov [#allocation2]  }
  0x4e   : > { %p2522_p7 = scmp.ne.s32.totalorder %s2830_s8, %s2521_s22  ;;  %s2526_s26 = sshll.u32 %s2646_s5, 4  ;;  %s2527_s26 = int_to_ptr.vmem [resolvable:$false] %s2526_s26 }
  0x4f   : > { %s2528_s15 = scalar_lea.vmem %s2527_s26, 256  ;;  %p2529_p5 = scmp.lt.s32.totalorder %s2830_s8, %s2527_s26 }
  0x50   : > { %p2524_p9 = pnand %p2522_p7, %p2510_p0  ;;  %p2530_p3 = scmp.lt.s32.totalorder %s2528_s15, %s2521_s22 }
  0x52   : > { %p2525_p13 = pneg %p2524_p9  ;;  %p2531_p4 = por %p2530_p3, %p2529_p5 }
  0x54   : > { %p2532_p1 = pnand %p2531_p4, %p2525_p13 }
  0x56   : > { %2535 = shalt.err (!%p2532_p1)
}
  0x57   : > { %2374 = dma.hbm_to_vmem [thread:$0]  (!%p2832_p11), %s2828_s24, 128, %s2830_s8, %s439_s20  }
  0x58   : > { %s2136_s14 = sshll.u32 %s2640_s16, 5  ;;  %s3229_s5 = sshll.u32 %s2821_s25, 1 }
  0x59   : > { %s2867_s27 = scalar_lea.hbm %s3185_s1, %s2136_s14  ;;  %s460_s15 = scalar_lea.vmem [#allocation5], %s3229_s5 }
  0x5a   : > { %s467_s22 = sshll.u32 %s460_s15, 4  ;;  %s3230_s26 = sand.u32 1, %s2640_s16   ;;  %s468_s22 = int_to_ptr.vmem [resolvable:$true] %s467_s22 }
  0x5b   : > { %s457_s0 = scalar_lea.sflag [#allocation6], %s3230_s26  ;;  %s2536_s13 = scalar_lea.hbm %s2867_s27, 32 }
  0x5c   : > { %p2537_p4 = scmp.ne.s32.totalorder %s2867_s27, %s2536_s13  ;;  %s2541_s24 = scalar_lea.hbm %s3185_s1, 64 }
  0x5d   : > { %p2542_p2 = scmp.lt.s32.totalorder %s2867_s27, %s3185_s1  ;;  %p2543_p6 = scmp.lt.s32.totalorder %s2541_s24, %s2536_s13 }
  0x5e   : > { %p2539_p3 = pnand %p2537_p4, %p2510_p0 }
  0x5f   : > { %p2544_p12 = por %p2543_p6, %p2542_p2 }
  0x60   : > { %p2540_p10 = pneg %p2539_p3 }
  0x62   : > { %p2545_p7 = pnand %p2544_p12, %p2540_p10 }
  0x64   : > { %2548 = shalt.err (!%p2545_p7)
}
  0x65   : > { %s2549_s28 = scalar_lea.vmem %s468_s22, 32  ;;  %s2647_s18 = smov [#allocation5]  }
  0x66   : > { %p2550_p9 = scmp.ne.s32.totalorder %s468_s22, %s2549_s28  ;;  %s2554_s5 = sshll.u32 %s2647_s18, 4  ;;  %s2555_s5 = int_to_ptr.vmem [resolvable:$false] %s2554_s5 }
  0x67   : > { %s2556_s15 = scalar_lea.vmem %s2555_s5, 64  ;;  %p2557_p1 = scmp.lt.s32.totalorder %s468_s22, %s2555_s5 }
  0x68   : > { %p2552_p13 = pnand %p2550_p9, %p2510_p0  ;;  %p2558_p4 = scmp.lt.s32.totalorder %s2556_s15, %s2549_s28 }
  0x6a   : > { %p2553_p5 = pneg %p2552_p13  ;;  %p2559_p3 = por %p2558_p4, %p2557_p1 }
  0x6c   : > { %p2560_p8 = pnand %p2559_p3, %p2553_p5 }
  0x6e   : > { %2563 = shalt.err (!%p2560_p8)
}
  0x6f   : > { %2377 = dma.hbm_to_vmem [thread:$0]  (!%p2832_p11), %s2867_s27, 32, %s468_s22, %s457_s0  }
  0x70   : > { %p3231_p10 = scmp.ne.s32.totalorder %s3219_s21, 0 }
  0x71   : > { %s2894_s13 = sand.u32 (!%p3231_p10), 1, %s2632_s30   ;;  %p3232_p8 = scmp.ne.s32.totalorder (!%p3231_p10), %s3216_s19, 0 }
  0x72   : > { %476 = sbr.rel (%p3231_p10) target bundleno = 3644 (0xe3c), region = 76  ;;  %s2138_s26 = sshll.u32 (!%p3231_p10), %s2894_s13, 3 }
  0x73   : > { %s479_s8 = scalar_lea.sflag (!%p3231_p10), [#allocation3], %s2894_s13  ;;  %s2900_s20 = scalar_lea.vmem (!%p3231_p10), [#allocation2], %s2138_s26 }
  0x77   : > { %2607 = dma.done.wait (%p3232_p8), %s479_s8, 128  }
  0x78   : > { %2609 = vsyncadd (%p3232_p8), %s479_s8, 4294967168  ;;  %s487_s0 = sand.u32 1, %s2751_s17   ;;  %s2139_s21 = sshll.u32 %s2894_s13, 1 }
  0x79   : > { %s488_s23 = scalar_lea.sflag [#allocation6], %s487_s0  ;;  %s2908_s27 = scalar_lea.vmem [#allocation5], %s2139_s21 }
  0x7a   : > { %2611 = dma.done.wait (%p3232_p8), %s488_s23, 32  }
  0x7b   : > { %2613 = vsyncadd (%p3232_p8), %s488_s23, 4294967264  ;;  %p3233_p11 = scmp.eq.s32.totalorder %s2751_s17, 0 }
  0x7d   : > { %2615 = dma.done.wait (%p3233_p11), [#allocation6], 512   ;;  %p3234_p0 = pmov %p3233_p11 }
  0x7f   : > { %2617 = vsyncadd (%p3234_p0), [#allocation6], 4294966784  ;;  %p3235_p2 = pmov %p3234_p0 }
  0x80   : > { %p3236_p6 = pmov %p3234_p0 }
  0x81   : > { %2619 = dma.done.wait (%p3235_p2), [#allocation9], 512  }
  0x82   : > { %2621 = vsyncadd (%p3236_p6), [#allocation9], 4294966784  ;;  %v2648_v0 = vmov 0.0   ;;  %vm2649_vm0 = vmmov 0   ;;  %v635_v1 = vld [vmem:[%s3187_s3 + $0x18] sm:$0xff]  ;;  %v634_v3 = vld [vmem:[%s3187_s3 + $0x10] sm:$0xff] }
  0x83   : > { %2238 = vmatprep.subr.mxu1 %v2648_v0  ;;  %2227 = vmatprep.subr.mxu0 %v2648_v0  ;;  %v557_v2 = vld [vmem:[%s3186_s2 + $0x18] sm:$0xff]  ;;  %v556_v4 = vld [vmem:[%s3186_s2 + $0x10] sm:$0xff]  ;;  %v633_v5 = vld [vmem:[%s3187_s3 + $0x8] sm:$0xff]  ;;  %vm558_vm1 = vcmask 261120   ;;  %vm780_vm2 = vcmask 64512   ;;  %s2650_s0 = smov 120  }
  0x84   : > { %2246 = vmatprep.mubr.msk.f32.mxu1 %vm2649_vm0, %v2648_v0  ;;  %2235 = vmatprep.mubr.msk.f32.mxu0 %vm2649_vm0, %v2648_v0  ;;  %v555_v6 = vld [vmem:[%s3186_s2 + $0x8] sm:$0xff]  ;;  %v632_v7 = vld [vmem:[%s3187_s3] sm:$0xff]  ;;  %v709_v10 = vld [vmem:[%s3188_s4 + $0x18] sm:$0xff]  ;;  %v2651_v23 = vmov 0   ;;  %s2653_s21 = smov 104   ;;  %vm1889_vm7 = vcmask 523264  }
  0x85   : > { %2239 = vmatpush3.msra.mxu1 %v635_v1  ;;  %2228 = vmatpush3.msra.mxu0 %v557_v2  ;;  %v554_v8 = vld [vmem:[%s3186_s2] sm:$0xff]  ;;  %v708_v11 = vld [vmem:[%s3188_s4 + $0x10] sm:$0xff]  ;;  %v707_v12 = vld [vmem:[%s3188_s4 + $0x8] sm:$0xff]  ;;  %s548_s23 = scalar_lea.vmem [#allocation10], %s2138_s26  ;;  %s3240_s14 = sld [smem:[#allocation25_spill]] }
  0x86   : > { %2240 = vmatprep.subr.mxu1 %v2648_v0  ;;  %2229 = vmatprep.subr.mxu0 %v2648_v0  ;;  %v2957_v9 = vld [vmem:[%s2900_s20] sm:$0xff]  ;;  %v552_v22 = vld [vmem:[%s2908_s27] sm:$0x3]  ;;  %s2652_s27 = smov 112   ;;  %v946_v55 = vld [vmem:[#allocation7] sm:$0xff]  ;;  %s2016_s19 = sshll.u32 %s548_s23, 4  ;;  %s2017_s19 = int_to_ptr.vmem [resolvable:$true] %s2016_s19 }
  0x87   : > { %2241 = vmatpush3.msra.mxu1 %v634_v3  ;;  %2230 = vmatpush3.msra.mxu0 %v556_v4  ;;  %v706_v13 = vld [vmem:[%s3188_s4] sm:$0xff]  ;;  %vm553_vm3 = vnez %v552_v22  ;;  %s2003_s20 = scalar_lea.sflag [#allocation4], %s2894_s13  ;;  %s2564_s28 = scalar_lea.vmem %s2017_s19, 128 }
  0x88   : > { %2242 = vmatprep.subr.mxu1 %v2648_v0  ;;  %2231 = vmatprep.subr.mxu0 %v2648_v0  ;;  %v858_v24 = vsel %vm553_vm3, 16843009, %v2651_v23  ;;  %v1115_v50 = vld [vmem:[#allocation7 + $0x8] sm:$0xff]  ;;  %p2565_p12 = scmp.ne.s32.totalorder %s2017_s19, %s2564_s28  ;;  %p3241_p7 = scmp.ne.s32.totalorder %s3225_s29, 0 }
  0x89   : > { %2243 = vmatpush3.msra.mxu1 %v633_v5  ;;  %2232 = vmatpush3.msra.mxu0 %v555_v6  ;;  %v859_v25 = vunpack.c.0.s8 %v858_v24  ;;  %s2654_s18 = smov [#allocation10]  }
  0x8a   : > { %2244 = vmatprep.subr.mxu1 %v2648_v0  ;;  %2233 = vmatprep.subr.mxu0 %v2648_v0  ;;  %p2566_p9 = pnand %p2565_p12, %p3241_p7 }
  0x8b   : > { %2245 = vmatpush3.msra.mxu1 %v632_v7  ;;  %2234 = vmatpush3.msra.mxu0 %v554_v8  ;;  %vm3016_vm4 = vcmp.ne.s32.totalorder %v859_v25, 0 }
  0x8c   : > { %2247 = vmatmul.mubr.msk.f32.vlgmr.msra.gmra.mxu1 %vm558_vm1, %v2957_v9  ;;  %2236 = vmatmul.mubr.msk.f32.vlgmr.msra.gmra.mxu0 %vm558_vm1, %v2957_v9  ;;  %p2567_p13 = pneg %p2566_p9 }
  0x8d   : > { %2249 = vmatprep.subr.mxu0 %v2648_v0  ;;  %2257 = vmatprep.mubr.msk.f32.mxu0 %vm2649_vm0, %v2648_v0 }
  0x8e   : > { %2250 = vmatpush3.msra.mxu0 %v709_v10  ;;  %2265 = vmatprep.subr.mxu1 %v2648_v0 }
  0x8f   : > { %2251 = vmatprep.subr.mxu0 %v2648_v0  ;;  %2267 = vmatprep.mubr.msk.f32.mxu1 %vm2649_vm0, %v2648_v0 }
  0x90   : > { %2252 = vmatpush3.msra.mxu0 %v708_v11 }
  0x91   : > { %2253 = vmatprep.subr.mxu0 %v2648_v0 }
  0x92   : > { %2254 = vmatpush3.msra.mxu0 %v707_v12 }
  0x93   : > { %2255 = vmatprep.subr.mxu0 %v2648_v0 }
  0x94   : > { %2256 = vmatpush3.msra.mxu0 %v706_v13 }
  0x95   : > { %2258 = vmatmul.mubr.msk.f32.vlgmr.msra.gmra.mxu0 %vm558_vm1, %v2957_v9  ;;  %2260 = vmatprep.subr.mxu0 %v2648_v0 }
  0x96   : > { %2262 = vmatprep.mubr.msk.f32.mxu0 %vm2649_vm0, %v2648_v0 }
 0x14c   : > { %v2991_v14 = vpop.f32.mrf.mxu1  ;;  %v2993_v15 = vpop.f32.mrf.mxu0 }
 0x14d   : > { %949 = vrot.lane.b32.xlu0 %v2991_v14, %s2650_s0  ;;  %2261 = vmatpush3.xpose.msk.msra.mxu0 %vm780_vm2, %v2991_v14 }
 0x14e   : > { %v2248_v16 = vpop.f32.mrf.mxu1  ;;  %v2237_v17 = vpop.f32.mrf.mxu0  ;;  %2270 = vmatprep.subr.mxu0 %v2648_v0 }
 0x150   : > { %2263 = vmatmul.mubr.msk.f32.vlgmr.msra.gmra.mxu0 %vm780_vm2, %v2993_v15 }
 0x151   : > { %947 = vrot.lane.b32.xlu0 %v2993_v15, %s2650_s0  ;;  %2272 = vmatprep.mubr.msk.f32.mxu0 %vm2649_vm0, %v2648_v0 }
 0x155   : > { %v3006_v18 = vpop.f32.mrf.mxu0 }
 0x156   : > { %2266 = vmatpush3.msra.mxu1 %v3006_v18 }
 0x157   : > { %v2259_v19 = vpop.f32.mrf.mxu0  ;;  %2275 = vmatprep.subr.mxu1 %v2648_v0 }
 0x1bf   : > { %v950_v20 = vpop.permute.xlu0 %949 }
 0x1c0   : > { %2271 = vmatpush3.xpose.msk.msra.mxu0 %vm780_vm2, %v950_v20 }
 0x1c1   : > { %2280 = vmatprep.subr.mxu0 %v2648_v0 }
 0x1c3   : > { %v948_v21 = vpop.permute.xlu0 %947 }
 0x1c4   : > { %2273 = vmatmul.mubr.msk.f32.vlgmr.msra.gmra.mxu0 %vm780_vm2, %v948_v21 }
 0x1c5   : > { %2282 = vmatprep.mubr.msk.f32.mxu0 %vm2649_vm0, %v2648_v0  ;;  %2281 = vmatpush3.msra.mxu0 %v1115_v50 }
 0x1c6   : > { %2290 = vmatprep.subr.mxu0 %v2648_v0 }
 0x210   : > { %v853_v26 = vpop.f32.mrf.mxu0 }
 0x211   : > { %v857_v28 = vmul.f32 0.35355338, %v853_v26 }
 0x212   : > { %v2264_v29 = vpop.f32.mrf.mxu0 }
 0x213   : > { %v861_v30 = vsel %vm3016_vm4, -1e+30, %v857_v28 }
 0x214   : > { %v862_v31 = vsel %vm780_vm2, %v861_v30, -inf }
 0x215   : > { %863 = vmax.xlane.f32.xlu1 %v862_v31 }
 0x284   : > { %v1021_v32 = vpop.f32.mrf.mxu0 }
 0x285   : > { %v1025_v33 = vmul.f32 0.35355338, %v1021_v32 }
 0x286   : > { %v2274_v34 = vpop.f32.mrf.mxu0 }
 0x287   : > { %v1026_v35 = vsel %vm3016_vm4, -1e+30, %v1025_v33 }
 0x288   : > { %v1027_v36 = vsel %vm780_vm2, %v1026_v35, -inf }
 0x289   : > { %1028 = vmax.xlane.f32.xlu1 %v1027_v36  ;;  %v1671_v36 = vld [vmem:[#allocation7 + $0x18] sm:$0xff] }
 0x29e   : > { %v864_v37 = vpop.xlane.xlu1 %863 }
 0x29f   : > { %v865_v38 = vsub.f32 %v861_v30, %v864_v37 }
 0x2a1   : > { %v866_v39 = vmul.f32 1.442695, %v865_v38 }
 0x2a3   : > { %2430 = vpow2.f32 %v866_v39 }
 0x2b0   : > { %v2431_v40 = vpop.eup %2430 }
 0x2b1   : > { %v868_v41 = vsel %vm780_vm2, %v2431_v40, 0.0 }
 0x2b2   : > { %869 = vadd.xlane.f32.xlu0 %v868_v41 }
 0x2c8   : > { %1353 = vrot.lane.b32.xlu0 %v3006_v18, %s2652_s27 }
 0x312   : > { %v1029_v42 = vpop.xlane.xlu1 %1028 }
 0x313   : > { %v1030_v43 = vsub.f32 %v1026_v35, %v1029_v42 }
 0x315   : > { %v1031_v44 = vmul.f32 1.442695, %v1030_v43 }
 0x317   : > { %2432 = vpow2.f32 %v1031_v44 }
 0x324   : > { %v2433_v45 = vpop.eup %2432 }
 0x325   : > { %v1033_v46 = vsel %vm780_vm2, %v2433_v45, 0.0 }
 0x326   : > { %1034 = vadd.xlane.f32.xlu1 %v1033_v46 }
 0x337   : > { %1039 = vrot.lane.b32.xlu1 %v3006_v18, %s2650_s0 }
 0x33b   : > { %v870_v47 = vpop.xlane.xlu0 %869  ;;  %1264 = vrot.lane.b32.xlu1 %v2991_v14, %s2652_s27 }
 0x33c   : > { %2434 = vrcp.f32 %v870_v47 }
 0x33f   : > { %1262 = vrot.lane.b32.xlu1 %v2993_v15, %s2652_s27  ;;  %v1354_v57 = vpop.permute.xlu0 %1353  ;;  %s3239_s27 = sld [smem:[#allocation24_spill]] }
 0x349   : > { %v2435_v48 = vpop.eup %2434 }
 0x34a   : > { %v872_v49 = vmul.f32 %v2435_v48, %v2431_v40 }
 0x34c   : > { %2268 = vmatmul.mubr.msk.f32.vlgmr.msra.gmra.mxu1 %vm780_vm2, %v872_v49 }
 0x34d   : > { %2277 = vmatprep.mubr.msk.f32.mxu1 %vm2649_vm0, %v2648_v0 }
 0x3af   : > { %v1035_v51 = vpop.xlane.xlu1 %1034 }
 0x3b0   : > { %2436 = vrcp.f32 %v1035_v51 }
 0x3b3   : > { %v1040_v52 = vpop.permute.xlu1 %1039 }
 0x3b4   : > { %2276 = vmatpush3.msra.mxu1 %v1040_v52 }
 0x3b5   : > { %2285 = vmatprep.subr.mxu1 %v2648_v0 }
 0x3b7   : > { %v1265_v59 = vpop.permute.xlu1 %1264 }
 0x3bb   : > { %v1263_v62 = vpop.permute.xlu1 %1262 }
 0x3bd   : > { %v2437_v53 = vpop.eup %2436 }
 0x3be   : > { %v1037_v54 = vmul.f32 %v2437_v53, %v2433_v45 }
 0x3c0   : > { %2278 = vmatmul.mubr.msk.f32.vlgmr.msra.gmra.mxu1 %vm780_vm2, %v1037_v54  ;;  %v1788_v54 = vld [vmem:[#allocation8 + $0x18] sm:$0xff] }
 0x3c1   : > { %2286 = vmatpush3.msra.mxu1 %v946_v55  ;;  %2287 = vmatprep.mubr.msk.f32.mxu1 %vm2649_vm0, %v2648_v0  ;;  %v1787_v55 = vld [vmem:[#allocation8 + $0x10] sm:$0xff] }
 0x3c2   : > { %2295 = vmatprep.subr.mxu1 %v2648_v0 }
 0x40c   : > { %v942_v56 = vpop.f32.mrf.mxu1 }
 0x40d   : > { %2288 = vmatmul.mubr.msk.f32.vlgmr.msra.gmra.mxu1 %vm780_vm2, %v942_v56  ;;  %v1786_v56 = vld [vmem:[#allocation8 + $0x8] sm:$0xff] }
 0x40e   : > { %2296 = vmatpush3.msra.mxu1 %v1354_v57  ;;  %v2269_v58 = vpop.f32.mrf.mxu1  ;;  %2297 = vmatprep.mubr.msk.f32.mxu1 %vm2649_vm0, %v2648_v0 }
 0x40f   : > { %2305 = vmatprep.subr.mxu1 %v2648_v0 }
 0x480   : > { %v1111_v60 = vpop.f32.mrf.mxu1 }
 0x481   : > { %2283 = vmatmul.mubr.msk.f32.vlgmr.msra.gmra.mxu0 %vm780_vm2, %v1111_v60 }
 0x482   : > { %2291 = vmatpush3.xpose.msk.msra.mxu0 %vm780_vm2, %v1265_v59  ;;  %v2279_v61 = vpop.f32.mrf.mxu1  ;;  %2292 = vmatprep.mubr.msk.f32.mxu0 %vm2649_vm0, %v2648_v0 }
 0x483   : > { %2300 = vmatprep.subr.mxu0 %v2648_v0 }
 0x485   : > { %2293 = vmatmul.mubr.msk.f32.vlgmr.msra.gmra.mxu0 %vm780_vm2, %v1263_v62 }
 0x486   : > { %2302 = vmatprep.mubr.msk.f32.mxu0 %vm2649_vm0, %v2648_v0 }
 0x4cd   : > { %v1258_v63 = vpop.f32.mrf.mxu1 }
 0x4cf   : > { %v2289_v1 = vpop.f32.mrf.mxu1 }
 0x541   : > { %v1185_v2 = vpop.f32.mrf.mxu0 }
 0x542   : > { %v1259_v35 = vadd.f32 %v1258_v63, %v1185_v2 }
 0x543   : > { %v2284_v3 = vpop.f32.mrf.mxu0 }
 0x544   : > { %v2162_v3 = vld [vmem:[%s3190_s6] ss:$0 sm:$0xff] }
 0x545   : > { %v1336_v4 = vpop.f32.mrf.mxu0 }
 0x546   : > { %v1340_v5 = vmul.f32 0.35355338, %v1336_v4 }
 0x547   : > { %v2294_v6 = vpop.f32.mrf.mxu0 }
 0x548   : > { %v1341_v7 = vsel %vm3016_vm4, -1e+30, %v1340_v5  ;;  %v2163_v5 = vld [vmem:[%s3191_s7] ss:$0 sm:$0xff] }
 0x549   : > { %v1342_v8 = vsel %vm780_vm2, %v1341_v7, -inf }
 0x54a   : > { %1343 = vmax.xlane.f32.xlu1 %v1342_v8  ;;  %v1881_v8 = vld [vmem:[%s3194_s10 + $0x38] sm:$0xff] }
 0x5d3   : > { %v1344_v10 = vpop.xlane.xlu1 %1343 }
 0x5d4   : > { %v1345_v11 = vsub.f32 %v1341_v7, %v1344_v10  ;;  %v1880_v10 = vld [vmem:[%s3194_s10 + $0x30] sm:$0xff] }
 0x5d6   : > { %v1346_v12 = vmul.f32 1.442695, %v1345_v11  ;;  %v1879_v11 = vld [vmem:[%s3194_s10 + $0x28] sm:$0xff] }
 0x5d8   : > { %2438 = vpow2.f32 %v1346_v12  ;;  %v1878_v12 = vld [vmem:[%s3194_s10 + $0x20] sm:$0xff] }
 0x5e5   : > { %v2439_v13 = vpop.eup %2438 }
 0x5e6   : > { %v1348_v16 = vsel %vm780_vm2, %v2439_v13, 0.0 }
 0x5e7   : > { %1349 = vadd.xlane.f32.xlu0 %v1348_v16  ;;  %v1876_v16 = vld [vmem:[%s3194_s10 + $0x10] sm:$0xff] }
 0x5fd   : > { %1506 = vrot.lane.b32.xlu0 %v2991_v14, %s2653_s21  ;;  %v1429_v14 = vld [vmem:[#allocation7 + $0x10] sm:$0xff] }
 0x5fe   : > { %2301 = vmatpush3.msra.mxu0 %v1429_v14 }
 0x5ff   : > { %2310 = vmatprep.subr.mxu0 %v2648_v0 }
 0x601   : > { %1504 = vrot.lane.b32.xlu0 %v2993_v15, %s2653_s21 }
 0x670   : > { %v1350_v17 = vpop.xlane.xlu0 %1349 }
 0x671   : > { %2440 = vrcp.f32 %v1350_v17  ;;  %v1875_v17 = vld [vmem:[%s3194_s10 + $0x8] sm:$0xff] }
 0x674   : > { %v1507_v20 = vpop.permute.xlu0 %1506 }
 0x678   : > { %v1505_v22 = vpop.permute.xlu0 %1504 }
 0x67e   : > { %v2441_v19 = vpop.eup %2440 }
 0x67f   : > { %v1352_v21 = vmul.f32 %v2441_v19, %v2439_v13  ;;  %v1877_v13 = vld [vmem:[%s3194_s10 + $0x18] sm:$0xff]  ;;  %v1874_v19 = vld [vmem:[%s3194_s10] sm:$0xff] }
 0x681   : > { %2298 = vmatmul.mubr.msk.f32.vlgmr.msra.gmra.mxu1 %vm780_vm2, %v1352_v21 }
 0x682   : > { %2306 = vmatpush3.xpose.msk.msra.mxu1 %vm780_vm2, %v1507_v20  ;;  %2307 = vmatprep.mubr.msk.f32.mxu1 %vm2649_vm0, %v2648_v0  ;;  %v2164_v20 = vld [vmem:[%s3193_s9] ss:$0 sm:$0xff] }
 0x683   : > { %2315 = vmatprep.subr.mxu1 %v2648_v0 }
 0x685   : > { %2308 = vmatmul.mubr.msk.f32.vlgmr.msra.gmra.mxu1 %vm780_vm2, %v1505_v22 }
 0x686   : > { %2317 = vmatprep.mubr.msk.f32.mxu1 %vm2649_vm0, %v2648_v0  ;;  %2316 = vmatpush3.msra.mxu1 %v1671_v36 }
 0x687   : > { %2331 = vmatprep.subr.mxu1 %v2648_v0 }
 0x741   : > { %v1425_v15 = vpop.f32.mrf.mxu1 }
 0x742   : > { %2303 = vmatmul.mubr.msk.f32.vlgmr.msra.gmra.mxu0 %vm780_vm2, %v1425_v15 }
 0x743   : > { %v2299_v23 = vpop.f32.mrf.mxu1  ;;  %2312 = vmatprep.mubr.msk.f32.mxu0 %vm2649_vm0, %v2648_v0 }
 0x745   : > { %v1578_v24 = vpop.f32.mrf.mxu1 }
 0x746   : > { %v1582_v25 = vmul.f32 0.35355338, %v1578_v24 }
 0x747   : > { %v2309_v26 = vpop.f32.mrf.mxu1 }
 0x748   : > { %v1583_v28 = vsel %vm3016_vm4, -1e+30, %v1582_v25 }
 0x749   : > { %v1584_v29 = vsel %vm780_vm2, %v1583_v28, -inf }
 0x74a   : > { %1585 = vmax.xlane.f32.xlu0 %v1584_v29 }
 0x7d3   : > { %v1586_v30 = vpop.xlane.xlu0 %1585 }
 0x7d4   : > { %v1587_v31 = vsub.f32 %v1583_v28, %v1586_v30 }
 0x7d6   : > { %v1588_v32 = vmul.f32 1.442695, %v1587_v31 }
 0x7d8   : > { %2442 = vpow2.f32 %v1588_v32 }
 0x7e5   : > { %v2443_v33 = vpop.eup %2442 }
 0x7e6   : > { %v1590_v34 = vsel %vm780_vm2, %v2443_v33, 0.0 }
 0x7e7   : > { %1591 = vadd.xlane.f32.xlu1 %v1590_v34 }
 0x7f8   : > { %1595 = vrot.lane.b32.xlu1 %v3006_v18, %s2653_s21  ;;  %s2171_s21 = sshll.u32 %s2751_s17, 7  ;;  %s2568_s17 = sshll.u32 %s2654_s18, 4  ;;  %s2569_s17 = int_to_ptr.vmem [resolvable:$false] %s2568_s17 }
 0x7f9   : > { %s2014_s25 = scalar_lea.hbm %s3240_s14, %s2171_s21  ;;  %s2570_s26 = scalar_lea.vmem %s2569_s17, 256 }
 0x7fa   : > { %p2571_p5 = scmp.lt.s32.totalorder %s2017_s19, %s2569_s17  ;;  %p2572_p1 = scmp.lt.s32.totalorder %s2570_s26, %s2564_s28 }
 0x7fc   : > { %p2573_p4 = por %p2572_p1, %p2571_p5 }
 0x7fe   : > { %p2574_p3 = pnand %p2573_p4, %p2567_p13 }
 0x802   : > { %v1499_v37 = vpop.f32.mrf.mxu0 }
 0x803   : > { %v1503_v27 = vadd.f32 %v1499_v37, %v1259_v35 }
 0x804   : > { %v2304_v38 = vpop.f32.mrf.mxu0 }
 0x870   : > { %v1592_v39 = vpop.xlane.xlu1 %1591 }
 0x871   : > { %2444 = vrcp.f32 %v1592_v39 }
 0x874   : > { %v1596_v40 = vpop.permute.xlu1 %1595 }
 0x875   : > { %2311 = vmatpush3.msra.mxu0 %v1596_v40 }
 0x876   : > { %2320 = vmatprep.subr.mxu0 %v2648_v0 }
 0x87e   : > { %v2445_v41 = vpop.eup %2444 }
 0x87f   : > { %v1594_v42 = vmul.f32 %v2445_v41, %v2443_v33 }
 0x881   : > { %2313 = vmatmul.mubr.msk.f32.vlgmr.msra.gmra.mxu0 %vm780_vm2, %v1594_v42 }
 0x882   : > { %2328 = vmatprep.mubr.msk.f32.mxu0 %vm2649_vm0, %v2648_v0  ;;  %2321 = vmatpush3.msra.mxu0 %v1788_v54 }
 0x883   : > { %2322 = vmatprep.subr.mxu0 %v2648_v0 }
 0x884   : > { %2323 = vmatpush3.msra.mxu0 %v1787_v55 }
 0x885   : > { %2324 = vmatprep.subr.mxu0 %v2648_v0 }
 0x886   : > { %2325 = vmatpush3.msra.mxu0 %v1786_v56 }
 0x887   : > { %2326 = vmatprep.subr.mxu0 %v2648_v0 }
 0x941   : > { %v1667_v18 = vpop.f32.mrf.mxu0 }
 0x942   : > { %2318 = vmatmul.mubr.msk.f32.vlgmr.msra.gmra.mxu1 %vm780_vm2, %v1667_v18 }
 0x943   : > { %v2314_v43 = vpop.f32.mrf.mxu0  ;;  %2347 = vmatprep.mubr.msk.f32.mxu1 %vm2649_vm0, %v2648_v0  ;;  %2332 = vmatpush3.msra.mxu1 %v1881_v8 }
 0x944   : > { %2333 = vmatprep.subr.mxu1 %v2648_v0 }
 0x945   : > { %2334 = vmatpush3.msra.mxu1 %v1880_v10 }
 0x946   : > { %2335 = vmatprep.subr.mxu1 %v2648_v0 }
 0x947   : > { %2336 = vmatpush3.msra.mxu1 %v1879_v11 }
 0x948   : > { %2337 = vmatprep.subr.mxu1 %v2648_v0 }
 0x949   : > { %2338 = vmatpush3.msra.mxu1 %v1878_v12 }
 0x94a   : > { %2339 = vmatprep.subr.mxu1 %v2648_v0 }
 0x94b   : > { %2340 = vmatpush3.msra.mxu1 %v1877_v13 }
 0x94c   : > { %2341 = vmatprep.subr.mxu1 %v2648_v0 }
 0x94d   : > { %2342 = vmatpush3.msra.mxu1 %v1876_v16 }
 0x94e   : > { %2343 = vmatprep.subr.mxu1 %v2648_v0 }
 0x94f   : > { %2344 = vmatpush3.msra.mxu1 %v1875_v17 }
 0x950   : > { %2345 = vmatprep.subr.mxu1 %v2648_v0  ;;  %v2166_v0 = vld [vmem:[%s3195_s11] ss:$0 sm:$0xff] }
 0x951   : > { %2346 = vmatpush3.msra.mxu1 %v1874_v19 }
 0xa02   : > { %v1741_v44 = vpop.f32.mrf.mxu1 }
 0xa03   : > { %v1745_v45 = vadd.f32 %v1741_v44, %v1503_v27 }
 0xa04   : > { %v2319_v46 = vpop.f32.mrf.mxu1 }
 0xa05   : > { %v1746_v47 = vadd.f32 %v1745_v45, %v2957_v9  ;;  %v1785_v9 = vld [vmem:[#allocation8] sm:$0xff]  ;;  %v2168_v45 = vld [vmem:[%s3196_s12] ss:$0 sm:$0xff] }
 0xa06   : > { %2327 = vmatpush3.msra.mxu0 %v1785_v9 }
 0xa07   : > { %v1749_v48 = vsel %vm558_vm1, %v1746_v47, 0.0 }
 0xa08   : > { %1750 = vadd.xlane.f32.xlu1 %v1749_v48 }
 0xa91   : > { %v1751_v49 = vpop.xlane.xlu1 %1750 }
 0xa92   : > { %v1753_v50 = vmul.f32 0.03125, %v1751_v49 }
 0xa94   : > { %v1754_v51 = vsub.f32 %v1746_v47, %v1753_v50  ;;  %v2169_v47 = vld [vmem:[%s3239_s27] ss:$0 sm:$0xff] }
 0xa96   : > { %v1755_v52 = vmul.f32 %v1754_v51, %v1754_v51 }
 0xa98   : > { %v1756_v53 = vsel %vm558_vm1, %v1755_v52, 0.0 }
 0xa99   : > { %1757 = vadd.xlane.f32.xlu0 %v1756_v53 }
 0xb22   : > { %v1758_v57 = vpop.xlane.xlu0 %1757 }
 0xb23   : > { %v1759_v58 = vmul.f32 0.032258064, %v1758_v57 }
 0xb25   : > { %2446 = vrsqrt.f32 %v1759_v58  ;;  %vm1762_vm5 = vcmp.eq.f32.partialorder %v1759_v58, inf  ;;  %v1765_v61 = vand.u32 2147483648, %v1759_v58  ;;  %vm1764_vm6 = vcmp.eq.f32.partialorder %v1759_v58, 0.0 }
 0xb32   : > { %v2447_v59 = vpop.eup %2446 }
 0xb33   : > { %v1761_v60 = vmul.f32 %v2447_v59, %v1759_v58 }
 0xb35   : > { %v1763_v62 = vsel %vm1762_vm5, %v1759_v58, %v1761_v60 }
 0xb36   : > { %v1766_v63 = vsel %vm1764_vm6, %v1765_v61, %v1763_v62 }
 0xb37   : > { %v1767_v1 = vmax.f32 %v1766_v63, 1e-06 }
 0xb39   : > { %2448 = vrcp.f32 %v1767_v1 }
 0xb46   : > { %v2449_v2 = vpop.eup %2448 }
 0xb47   : > { %v1770_v4 = vmul.f32 %v2449_v2, %v1754_v51 }
 0xb49   : > { %v1777_v6 = vmul.f32 %v2162_v3, %v1770_v4 }
 0xb4b   : > { %v1784_v7 = vadd.f32 %v2163_v5, %v1777_v6 }
 0xb4d   : > { %2329 = vmatmul.mubr.msk.f32.vlgmr.msra.gmra.mxu0 %vm558_vm1, %v1784_v7 }
 0xc0d   : > { %v1865_v21 = vpop.f32.mrf.mxu0 }
 0xc0e   : > { %v1866_v22 = vadd.f32 %v2164_v20, %v1865_v21 }
 0xc0f   : > { %v2330_v14 = vpop.f32.mrf.mxu0 }
 0xc10   : > { %v1870_v15 = vmul.f32 0.70710677, %v1866_v22  ;;  %v1869_v24 = vmul.f32 0.5, %v1866_v22 }
 0xc12   : > { %2450 = verf.f32 %v1870_v15 }
 0xc1f   : > { %v2451_v23 = vpop.eup %2450 }
 0xc20   : > { %v1872_v25 = vadd.f32 1.0, %v2451_v23 }
 0xc22   : > { %v1873_v26 = vmul.f32 %v1872_v25, %v1869_v24 }
 0xc24   : > { %2348 = vmatmul.mubr.msk.f32.vlgmr.msra.gmra.mxu1 %vm1889_vm7, %v1873_v26 }
 0xce4   : > { %v1959_v28 = vpop.f32.mrf.mxu1 }
 0xce5   : > { %v1960_v29 = vadd.f32 %v2166_v0, %v1959_v28 }
 0xce6   : > { %v2349_v30 = vpop.f32.mrf.mxu1 }
 0xce7   : > { %v1963_v31 = vadd.f32 %v1960_v29, %v1784_v7 }
 0xce9   : > { %v1966_v32 = vsel %vm558_vm1, %v1963_v31, 0.0 }
 0xcea   : > { %1967 = vadd.xlane.f32.xlu0 %v1966_v32 }
 0xd73   : > { %v1968_v33 = vpop.xlane.xlu0 %1967 }
 0xd74   : > { %v1969_v34 = vmul.f32 0.03125, %v1968_v33 }
 0xd76   : > { %v1970_v35 = vsub.f32 %v1963_v31, %v1969_v34 }
 0xd78   : > { %v1971_v36 = vmul.f32 %v1970_v35, %v1970_v35 }
 0xd7a   : > { %v1972_v37 = vsel %vm558_vm1, %v1971_v36, 0.0 }
 0xd7b   : > { %1973 = vadd.xlane.f32.xlu0 %v1972_v37 }
 0xe04   : > { %v1974_v27 = vpop.xlane.xlu0 %1973 }
 0xe05   : > { %v1975_v38 = vmul.f32 0.032258064, %v1974_v27 }
 0xe07   : > { %2452 = vrsqrt.f32 %v1975_v38  ;;  %vm1978_vm8 = vcmp.eq.f32.partialorder %v1975_v38, inf  ;;  %v1981_v41 = vand.u32 2147483648, %v1975_v38  ;;  %vm1980_vm9 = vcmp.eq.f32.partialorder %v1975_v38, 0.0 }
 0xe14   : > { %v2453_v39 = vpop.eup %2452 }
 0xe15   : > { %v1977_v40 = vmul.f32 %v2453_v39, %v1975_v38 }
 0xe17   : > { %v1979_v42 = vsel %vm1978_vm8, %v1975_v38, %v1977_v40 }
 0xe18   : > { %v1982_v18 = vsel %vm1980_vm9, %v1981_v41, %v1979_v42 }
 0xe19   : > { %v1983_v43 = vmax.f32 %v1982_v18, 1e-06 }
 0xe1b   : > { %2454 = vrcp.f32 %v1983_v43 }
 0xe28   : > { %v2455_v44 = vpop.eup %2454 }
 0xe29   : > { %v1986_v46 = vmul.f32 %v2455_v44, %v1970_v35 }
 0xe2b   : > { %v1993_v48 = vmul.f32 %v2168_v45, %v1986_v46 }
 0xe2d   : > { %v2000_v49 = vadd.f32 %v2169_v47, %v1993_v48 }
 0xe2f   : > { %2001 = vst.msk [vmem:[%s548_s23] sm:$0xff] %vm558_vm1, %v2000_v49 }
 0xe30   : > { %2577 = shalt.err (!%p2574_p3)
}
 0xe31   : > { %s2578_s5 = scalar_lea.hbm %s2014_s25, 128  ;;  %s2582_s8 = scalar_lea.hbm %s3240_s14, 256 }
 0xe32   : > { %p2579_p10 = scmp.ne.s32.totalorder %s2014_s25, %s2578_s5  ;;  %p2583_p0 = scmp.lt.s32.totalorder %s2014_s25, %s3240_s14 }
 0xe33   : > { %p2584_p2 = scmp.lt.s32.totalorder %s2582_s8, %s2578_s5 }
 0xe34   : > { %p2580_p8 = pnand %p2579_p10, %p3241_p7 }
 0xe35   : > { %p2585_p6 = por %p2584_p2, %p2583_p0 }
 0xe36   : > { %p2581_p11 = pneg %p2580_p8 }
 0xe38   : > { %p2586_p12 = pnand %p2585_p6, %p2581_p11 }
 0xe3a   : > { %2589 = shalt.err (!%p2586_p12)
}
 0xe3b   : > { %2362 = dma.vmem_to_hbm [thread:$0]  (%p3241_p7), %s2017_s19, 128, %s2014_s25, %s2003_s20  }
 0xe3c PF: > { %s3242_s21 = sld [smem:[#allocation16_spill]]  ;;  %p3245_p13 = scmp.ge.s32.totalorder %s2640_s16, 2 }
 0xe3d   : > { %s3243_s23 = sld [smem:[#allocation18_spill]] }
 0xe42   : > { %s2028_s22 = sand.u32 1, %s3242_s21  }
 0xe43   : > { %p3244_p9 = scmp.ne.s32.totalorder %s3243_s23, 0  ;;  %s2029_s24 = scalar_lea.sflag [#allocation4], %s2028_s22 }
 0xe45   : > { %p2379_p5 = pnand %p3245_p13, %p3244_p9 }
 0xe47   : > { %p2380_p1 = pneg %p2379_p5 }
 0xe49   : > { %2623 = dma.done.wait (%p2380_p1), %s2029_s24, 128  }
 0xe4a   : > { %2625 = vsyncadd (%p2380_p1), %s2029_s24, 4294967168  ;;  %s3246_s16 = sld [smem:[#allocation19_spill]]  ;;  %s3249_s29 = smov %s2632_s30 }
 0xe4b   : > { %s3247_s28 = sld [smem:[#allocation17_spill]] }
 0xe4c   : > { %s3248_s15 = sld [smem:[#allocation20_spill]] }
 0xe50   : > { %p31_p4 = scmp.ge.s32.totalorder %s3246_s16, 4  }
 0xe51   : > { %s3250_s30 = smov %s3247_s28 }
 0xe52   :  { %33 = sbr.rel (!%p31_p4) target bundleno = 14 (0xe), region = 142 }
 0xe57   :  { %2034 = vsyncpa [#allocation3], 1 }
 0xe58   :  { %2036 = vsyncpa [#allocation3 + $0x1], 1 }
 0xe59   :  { %2037 = vsyncpa [#allocation6], 1 }
 0xe5a   :  { %2039 = vsyncpa [#allocation6 + $0x1], 1 }
 0xe5b   :  { %2040 = vsyncpa [#allocation9], 1 }
 0xe5c   :  { %2041 = vsyncpa [#allocation4], 1 }
 0xe5d   :  { %2043 = vsyncpa [#allocation4 + $0x1], 1 }

</bundles_post_ra>
